<compile_context>
chip_gen: v7x
topology: tpu7x:2x2x1
jax: 0.10.0
libtpu: 0.0.40
codegen_flags: <defaults>
</compile_context>

<pallas_src>
import jax
import jax.numpy as jnp
from jax.experimental import pallas as pl
from jax.experimental.pallas import tpu as pltpu


# ------------------------------ fused kernel ---------------------------------
def _make_fused_kernel(num_layers, T, B, H):
    def kernel(*refs):
        x_ref = refs[0]                                 # (T, B, D_in) time-major
        w_refs = refs[1:1 + 3 * num_layers]             # per layer: wih_t, whh_t, bias
        fcw_ref, fcb_ref, out_ref = refs[1 + 3 * num_layers:]

        f32 = jnp.float32
        # Current layer inputs: one (B, D_l) value per timestep (vreg-resident).
        inputs = [x_ref[t].astype(f32) for t in range(T)]

        h = None
        for layer in range(num_layers):                 # static over layers
            wih = w_refs[3 * layer][...]                # (D_l, 4H) pre-T, g-cols x2
            whh = w_refs[3 * layer + 1][...]            # (H,  4H) pre-T, g-cols x2
            bias = w_refs[3 * layer + 2][...]           # (1,  4H) b_ih+b_hh, g x2

            # Hoisted, non-recurrent input projection: these T dots are mutually
            # independent (pipeline on the MXU) and sit off the serial h->h chain.
            gx = [jnp.dot(inputs[t], wih, preferred_element_type=f32) + bias
                  for t in range(T)]

            h = jnp.zeros((B, H), f32)
            c = jnp.zeros((B, H), f32)
            outs = []
            for t in range(T):                          # fully static / unrolled
                # Only the recurrent term stays on the serial critical path.
                g = gx[t] + jnp.dot(h, whh, preferred_element_type=f32)  # (B, 4H)
                # ONE sigmoid over the full gate vector (single EUP pass).
                # g-gate pre-activations were pre-scaled by 2 in prepare_params,
                # so tanh(a) == 2*sigmoid(2a) - 1 falls out of the same pass.
                s = jax.nn.sigmoid(g)
                i_g = s[:, 0 * H:1 * H]
                f_g = s[:, 1 * H:2 * H]
                g_g = 2.0 * s[:, 2 * H:3 * H] - 1.0     # == tanh(raw g pre-act)
                o_g = s[:, 3 * H:4 * H]
                c = f_g * c + i_g * g_g
                h = o_g * jnp.tanh(c)
                outs.append(h)                          # inter-layer seq stays in vregs
            inputs = outs

        # FC head on the final hidden state only (== out[:, -1, :] @ W^T + b).
        y = jnp.dot(h, fcw_ref[...], preferred_element_type=f32) + fcb_ref[...]
        out_ref[...] = y.astype(out_ref.dtype)          # single lane-masked store

    return kernel


# ------------------------------- model wrapper --------------------------------
def lstm_model_forward(x, prepared):
    """x: (B, T, input_size), batch_first — same as the PyTorch module."""
    B, T, D_in = x.shape
    num_layers = len(prepared["lstm"])
    H = prepared["lstm"][0]["whh_t"].shape[0]
    O = prepared["fc_b2"].shape[-1]

    # Single tiny layout op; producers that already emit time-major (T, B, D)
    # input can feed the kernel directly and skip it.
    xt = jnp.transpose(x, (1, 0, 2))                    # (T, B, D_in)

    inputs = [xt]
    in_specs = [pl.BlockSpec((T, B, D_in), lambda i: (0, 0, 0))]
    for lp in prepared["lstm"]:
        inputs += [lp["wih_t"], lp["whh_t"], lp["bias"]]
        in_specs += [
            pl.BlockSpec(lp["wih_t"].shape, lambda i: (0, 0)),
            pl.BlockSpec(lp["whh_t"].shape, lambda i: (0, 0)),
            pl.BlockSpec(lp["bias"].shape, lambda i: (0, 0)),
        ]
    inputs += [prepared["fc_w_t"], prepared["fc_b2"]]
    in_specs += [
        pl.BlockSpec(prepared["fc_w_t"].shape, lambda i: (0, 0)),
        pl.BlockSpec(prepared["fc_b2"].shape, lambda i: (0, 0)),
    ]

    y = pl.pallas_call(
        _make_fused_kernel(num_layers, T, B, H),
        out_shape=jax.ShapeDtypeStruct((B, O), x.dtype),
        grid_spec=pltpu.PrefetchScalarGridSpec(
            num_scalar_prefetch=0,
            grid=(1,),
            in_specs=in_specs,
            out_specs=pl.BlockSpec((B, O), lambda i: (0, 0)),
        ),
        compiler_params=pltpu.CompilerParams(
            dimension_semantics=("arbitrary",),
            # Everything resident is <100 KB at these shapes; 32 MiB is within
            # the scoped ceiling on v5e/v6e (128 MiB) AND v7x (64 MiB physical).
            vmem_limit_bytes=32 * 1024 * 1024,
        ),
    )(*inputs)

    return {"action": y[:, :3], "object": y[:, 3:6], "location": y[:, 6:]}


# --------------------------- deterministic init --------------------------------
def init_params(key, input_size, hidden_size, num_layers, output_size):
    k = 1.0 / jnp.sqrt(hidden_size)                     # PyTorch default U(-k, k)
    params = {"lstm": []}
    for layer in range(num_layers):
        d_in = input_size if layer == 0 else hidden_size
        key, k1, k2, k3, k4 = jax.random.split(key, 5)
        params["lstm"].append({
            "w_ih": jax.random.uniform(k1, (4 * hidden_size, d_in),
                                       jnp.float32, -k, k),
            "w_hh": jax.random.uniform(k2, (4 * hidden_size, hidden_size),
                                       jnp.float32, -k, k),
            "b_ih": jax.random.uniform(k3, (4 * hidden_size,),
                                       jnp.float32, -k, k),
            "b_hh": jax.random.uniform(k4, (4 * hidden_size,),
                                       jnp.float32, -k, k),
        })
    key, k5, k6 = jax.random.split(key, 3)
    params["fc_w"] = jax.random.uniform(k5, (output_size, hidden_size),
                                        jnp.float32, -k, k)
    params["fc_b"] = jax.random.uniform(k6, (output_size,),
                                        jnp.float32, -k, k)
    return params


def prepare_params(params):
    """One-time weight prep (perf feedback):
       * pre-transpose W_ih / W_hh / fc_w,
       * fold b_ih + b_hh into one bias row,
       * pre-scale the g-gate rows by 2 so the kernel can realize
         tanh(a) = 2*sigmoid(2a) - 1 from a single full-vector sigmoid.
       (At realistic H, also cast wih_t / whh_t / fc_w_t to bf16 here and cast
        activations to bf16 at the dot — kept f32 at these toy shapes.)"""
    prepared = {"lstm": []}
    for lp in params["lstm"]:
        H4 = lp["w_ih"].shape[0]
        H = H4 // 4
        scale = jnp.ones((H4,), jnp.float32).at[2 * H:3 * H].set(2.0)
        prepared["lstm"].append({
            "wih_t": jnp.transpose(lp["w_ih"] * scale[:, None]),       # (D_in, 4H)
            "whh_t": jnp.transpose(lp["w_hh"] * scale[:, None]),       # (H,   4H)
            "bias": ((lp["b_ih"] + lp["b_hh"]) * scale).reshape(1, -1),  # (1, 4H)
        })
    prepared["fc_w_t"] = jnp.transpose(params["fc_w"])                  # (H, O)
    prepared["fc_b2"] = params["fc_b"].reshape(1, -1)                   # (1, O)
    return prepared


# ------------------------------ pure-JAX reference ------------------------------
def _reference_forward(x, params):
    h_seq = jnp.transpose(x, (1, 0, 2))
    for lp in params["lstm"]:
        H = lp["w_hh"].shape[1]
        B = x.shape[0]

        def step(carry, x_t):
            h, c = carry
            g = (x_t @ lp["w_ih"].T + lp["b_ih"] + h @ lp["w_hh"].T + lp["b_hh"])
            i = jax.nn.sigmoid(g[:, :H])
            f = jax.nn.sigmoid(g[:, H:2 * H])
            gg = jnp.tanh(g[:, 2 * H:3 * H])
            o = jax.nn.sigmoid(g[:, 3 * H:])
            c = f * c + i * gg
            h = o * jnp.tanh(c)
            return (h, c), h

        init = (jnp.zeros((B, H), jnp.float32), jnp.zeros((B, H), jnp.float32))
        _, h_seq = jax.lax.scan(step, init, h_seq)
    y = h_seq[-1] @ params["fc_w"].T + params["fc_b"]
    return {"action": y[:, :3], "object": y[:, 3:6], "location": y[:, 6:]}


if __name__ == "__main__":
    B, T, INPUT, HIDDEN, LAYERS, OUT = 2, 8, 16, 32, 2, 9

    key = jax.random.PRNGKey(0)
    key, kx = jax.random.split(key)
    x = jax.random.normal(kx, (B, T, INPUT), jnp.float32)
    params = init_params(key, INPUT, HIDDEN, LAYERS, OUT)
    prepared = prepare_params(params)

    fwd = jax.jit(lstm_model_forward)
    out = fwd(x, prepared)
    out = jax.tree_util.tree_map(jax.block_until_ready, out)

    ref = _reference_forward(x, params)
    for name in ("action", "object", "location"):
        assert out[name].shape == ref[name].shape, name
        # tanh expressed as 2*sigmoid(2x)-1 changes EUP rounding slightly.
        assert jnp.allclose(out[name], ref[name], rtol=1e-4, atol=1e-4), name

    print("KERNEL_OK")
</pallas_src>

<mosaic_0001>
module attributes {stable_mosaic.version = 11 : i64} {
  func.func @kernel(%arg0: i32, %arg1: memref<8x2x16xf32, #tpu.memory_space<vmem>>, %arg2: memref<16x128xf32, #tpu.memory_space<vmem>>, %arg3: memref<32x128xf32, #tpu.memory_space<vmem>>, %arg4: memref<1x128xf32, #tpu.memory_space<vmem>>, %arg5: memref<32x128xf32, #tpu.memory_space<vmem>>, %arg6: memref<32x128xf32, #tpu.memory_space<vmem>>, %arg7: memref<1x128xf32, #tpu.memory_space<vmem>>, %arg8: memref<32x9xf32, #tpu.memory_space<vmem>>, %arg9: memref<1x9xf32, #tpu.memory_space<vmem>>, %arg10: memref<2x9xf32, #tpu.memory_space<vmem>>) attributes {dimension_semantics = [#tpu.dimension_semantics<arbitrary>], iteration_bounds = array<i64: 1>, scalar_prefetch = 0 : i64, scratch_operands = 0 : i64, tpu.core_type = #tpu.core_type<tc>, window_params = [{pipeline_mode = #tpu.pipeline_mode<synchronous>, transform_indices = @transform_0, window_bounds = array<i64: 8, 2, 16>}, {pipeline_mode = #tpu.pipeline_mode<synchronous>, transform_indices = @transform_1, window_bounds = array<i64: 16, 128>}, {pipeline_mode = #tpu.pipeline_mode<synchronous>, transform_indices = @transform_2, window_bounds = array<i64: 32, 128>}, {pipeline_mode = #tpu.pipeline_mode<synchronous>, transform_indices = @transform_3, window_bounds = array<i64: 1, 128>}, {pipeline_mode = #tpu.pipeline_mode<synchronous>, transform_indices = @transform_4, window_bounds = array<i64: 32, 128>}, {pipeline_mode = #tpu.pipeline_mode<synchronous>, transform_indices = @transform_5, window_bounds = array<i64: 32, 128>}, {pipeline_mode = #tpu.pipeline_mode<synchronous>, transform_indices = @transform_6, window_bounds = array<i64: 1, 128>}, {pipeline_mode = #tpu.pipeline_mode<synchronous>, transform_indices = @transform_7, window_bounds = array<i64: 32, 9>}, {pipeline_mode = #tpu.pipeline_mode<synchronous>, transform_indices = @transform_8, window_bounds = array<i64: 1, 9>}, {pipeline_mode = #tpu.pipeline_mode<synchronous>, transform_indices = @transform_9, window_bounds = array<i64: 2, 9>}]} {
    %c0 = arith.constant 0 : index
    %c0_0 = arith.constant 0 : index
    %c0_1 = arith.constant 0 : index
    %0 = vector.load %arg1[%c0, %c0_0, %c0_1] : memref<8x2x16xf32, #tpu.memory_space<vmem>>, vector<1x2x16xf32>
    %1 = vector.shape_cast %0 : vector<1x2x16xf32> to vector<2x16xf32>
    %c1 = arith.constant 1 : index
    %c0_2 = arith.constant 0 : index
    %c0_3 = arith.constant 0 : index
    %2 = vector.load %arg1[%c1, %c0_2, %c0_3] : memref<8x2x16xf32, #tpu.memory_space<vmem>>, vector<1x2x16xf32>
    %3 = vector.shape_cast %2 : vector<1x2x16xf32> to vector<2x16xf32>
    %c2 = arith.constant 2 : index
    %c0_4 = arith.constant 0 : index
    %c0_5 = arith.constant 0 : index
    %4 = vector.load %arg1[%c2, %c0_4, %c0_5] : memref<8x2x16xf32, #tpu.memory_space<vmem>>, vector<1x2x16xf32>
    %5 = vector.shape_cast %4 : vector<1x2x16xf32> to vector<2x16xf32>
    %c3 = arith.constant 3 : index
    %c0_6 = arith.constant 0 : index
    %c0_7 = arith.constant 0 : index
    %6 = vector.load %arg1[%c3, %c0_6, %c0_7] : memref<8x2x16xf32, #tpu.memory_space<vmem>>, vector<1x2x16xf32>
    %7 = vector.shape_cast %6 : vector<1x2x16xf32> to vector<2x16xf32>
    %c4 = arith.constant 4 : index
    %c0_8 = arith.constant 0 : index
    %c0_9 = arith.constant 0 : index
    %8 = vector.load %arg1[%c4, %c0_8, %c0_9] : memref<8x2x16xf32, #tpu.memory_space<vmem>>, vector<1x2x16xf32>
    %9 = vector.shape_cast %8 : vector<1x2x16xf32> to vector<2x16xf32>
    %c5 = arith.constant 5 : index
    %c0_10 = arith.constant 0 : index
    %c0_11 = arith.constant 0 : index
    %10 = vector.load %arg1[%c5, %c0_10, %c0_11] : memref<8x2x16xf32, #tpu.memory_space<vmem>>, vector<1x2x16xf32>
    %11 = vector.shape_cast %10 : vector<1x2x16xf32> to vector<2x16xf32>
    %c6 = arith.constant 6 : index
    %c0_12 = arith.constant 0 : index
    %c0_13 = arith.constant 0 : index
    %12 = vector.load %arg1[%c6, %c0_12, %c0_13] : memref<8x2x16xf32, #tpu.memory_space<vmem>>, vector<1x2x16xf32>
    %13 = vector.shape_cast %12 : vector<1x2x16xf32> to vector<2x16xf32>
    %c7 = arith.constant 7 : index
    %c0_14 = arith.constant 0 : index
    %c0_15 = arith.constant 0 : index
    %14 = vector.load %arg1[%c7, %c0_14, %c0_15] : memref<8x2x16xf32, #tpu.memory_space<vmem>>, vector<1x2x16xf32>
    %15 = vector.shape_cast %14 : vector<1x2x16xf32> to vector<2x16xf32>
    %c0_16 = arith.constant 0 : index
    %c0_17 = arith.constant 0 : index
    %16 = vector.load %arg2[%c0_16, %c0_17] : memref<16x128xf32, #tpu.memory_space<vmem>>, vector<16x128xf32>
    %c0_18 = arith.constant 0 : index
    %c0_19 = arith.constant 0 : index
    %17 = vector.load %arg3[%c0_18, %c0_19] : memref<32x128xf32, #tpu.memory_space<vmem>>, vector<32x128xf32>
    %c0_20 = arith.constant 0 : index
    %c0_21 = arith.constant 0 : index
    %18 = vector.load %arg4[%c0_20, %c0_21] : memref<1x128xf32, #tpu.memory_space<vmem>>, vector<1x128xf32>
    %cst = arith.constant dense<0.000000e+00> : vector<2x128xf32>
    %19 = tpu.matmul %1, %16, %cst {dimension_numbers = #tpu.dot_dimension_numbers<[1], [0], [0], [1], [0, 0, 1, 1], [], []>} : vector<2x16xf32>, vector<16x128xf32>, vector<2x128xf32> -> vector<2x128xf32>
    %20 = vector.broadcast %18 : vector<1x128xf32> to vector<2x128xf32>
    %21 = arith.addf %19, %20 : vector<2x128xf32>
    %cst_22 = arith.constant dense<0.000000e+00> : vector<2x128xf32>
    %22 = tpu.matmul %3, %16, %cst_22 {dimension_numbers = #tpu.dot_dimension_numbers<[1], [0], [0], [1], [0, 0, 1, 1], [], []>} : vector<2x16xf32>, vector<16x128xf32>, vector<2x128xf32> -> vector<2x128xf32>
    %23 = vector.broadcast %18 : vector<1x128xf32> to vector<2x128xf32>
    %24 = arith.addf %22, %23 : vector<2x128xf32>
    %cst_23 = arith.constant dense<0.000000e+00> : vector<2x128xf32>
    %25 = tpu.matmul %5, %16, %cst_23 {dimension_numbers = #tpu.dot_dimension_numbers<[1], [0], [0], [1], [0, 0, 1, 1], [], []>} : vector<2x16xf32>, vector<16x128xf32>, vector<2x128xf32> -> vector<2x128xf32>
    %26 = vector.broadcast %18 : vector<1x128xf32> to vector<2x128xf32>
    %27 = arith.addf %25, %26 : vector<2x128xf32>
    %cst_24 = arith.constant dense<0.000000e+00> : vector<2x128xf32>
    %28 = tpu.matmul %7, %16, %cst_24 {dimension_numbers = #tpu.dot_dimension_numbers<[1], [0], [0], [1], [0, 0, 1, 1], [], []>} : vector<2x16xf32>, vector<16x128xf32>, vector<2x128xf32> -> vector<2x128xf32>
    %29 = vector.broadcast %18 : vector<1x128xf32> to vector<2x128xf32>
    %30 = arith.addf %28, %29 : vector<2x128xf32>
    %cst_25 = arith.constant dense<0.000000e+00> : vector<2x128xf32>
    %31 = tpu.matmul %9, %16, %cst_25 {dimension_numbers = #tpu.dot_dimension_numbers<[1], [0], [0], [1], [0, 0, 1, 1], [], []>} : vector<2x16xf32>, vector<16x128xf32>, vector<2x128xf32> -> vector<2x128xf32>
    %32 = vector.broadcast %18 : vector<1x128xf32> to vector<2x128xf32>
    %33 = arith.addf %31, %32 : vector<2x128xf32>
    %cst_26 = arith.constant dense<0.000000e+00> : vector<2x128xf32>
    %34 = tpu.matmul %11, %16, %cst_26 {dimension_numbers = #tpu.dot_dimension_numbers<[1], [0], [0], [1], [0, 0, 1, 1], [], []>} : vector<2x16xf32>, vector<16x128xf32>, vector<2x128xf32> -> vector<2x128xf32>
    %35 = vector.broadcast %18 : vector<1x128xf32> to vector<2x128xf32>
    %36 = arith.addf %34, %35 : vector<2x128xf32>
    %cst_27 = arith.constant dense<0.000000e+00> : vector<2x128xf32>
    %37 = tpu.matmul %13, %16, %cst_27 {dimension_numbers = #tpu.dot_dimension_numbers<[1], [0], [0], [1], [0, 0, 1, 1], [], []>} : vector<2x16xf32>, vector<16x128xf32>, vector<2x128xf32> -> vector<2x128xf32>
    %38 = vector.broadcast %18 : vector<1x128xf32> to vector<2x128xf32>
    %39 = arith.addf %37, %38 : vector<2x128xf32>
    %cst_28 = arith.constant dense<0.000000e+00> : vector<2x128xf32>
    %40 = tpu.matmul %15, %16, %cst_28 {dimension_numbers = #tpu.dot_dimension_numbers<[1], [0], [0], [1], [0, 0, 1, 1], [], []>} : vector<2x16xf32>, vector<16x128xf32>, vector<2x128xf32> -> vector<2x128xf32>
    %41 = vector.broadcast %18 : vector<1x128xf32> to vector<2x128xf32>
    %42 = arith.addf %40, %41 : vector<2x128xf32>
    %cst_29 = arith.constant 0.000000e+00 : f32
    %43 = vector.broadcast %cst_29 : f32 to vector<2x32xf32>
    %cst_30 = arith.constant 0.000000e+00 : f32
    %44 = vector.broadcast %cst_30 : f32 to vector<2x32xf32>
    %cst_31 = arith.constant dense<0.000000e+00> : vector<2x128xf32>
    %45 = tpu.matmul %43, %17, %cst_31 {dimension_numbers = #tpu.dot_dimension_numbers<[1], [0], [0], [1], [0, 0, 1, 1], [], []>} : vector<2x32xf32>, vector<32x128xf32>, vector<2x128xf32> -> vector<2x128xf32>
    %46 = arith.addf %21, %45 : vector<2x128xf32>
    %47 = arith.negf %46 : vector<2x128xf32>
    %48 = math.exp %47 : vector<2x128xf32>
    %cst_32 = arith.constant 1.000000e+00 : f32
    %49 = vector.broadcast %cst_32 : f32 to vector<2x128xf32>
    %50 = arith.addf %49, %48 : vector<2x128xf32>
    %51 = arith.divf %49, %50 : vector<2x128xf32>
    %52 = vector.extract_strided_slice %51 {offsets = [0, 0], sizes = [2, 32], strides = [1, 1]} : vector<2x128xf32> to vector<2x32xf32>
    %53 = vector.extract_strided_slice %51 {offsets = [0, 32], sizes = [2, 32], strides = [1, 1]} : vector<2x128xf32> to vector<2x32xf32>
    %54 = vector.extract_strided_slice %51 {offsets = [0, 64], sizes = [2, 32], strides = [1, 1]} : vector<2x128xf32> to vector<2x32xf32>
    %cst_33 = arith.constant 2.000000e+00 : f32
    %55 = vector.broadcast %cst_33 : f32 to vector<2x32xf32>
    %56 = arith.mulf %55, %54 : vector<2x32xf32>
    %cst_34 = arith.constant 1.000000e+00 : f32
    %57 = vector.broadcast %cst_34 : f32 to vector<2x32xf32>
    %58 = arith.subf %56, %57 : vector<2x32xf32>
    %59 = vector.extract_strided_slice %51 {offsets = [0, 96], sizes = [2, 32], strides = [1, 1]} : vector<2x128xf32> to vector<2x32xf32>
    %60 = arith.mulf %53, %44 : vector<2x32xf32>
    %61 = arith.mulf %52, %58 : vector<2x32xf32>
    %62 = arith.addf %60, %61 : vector<2x32xf32>
    %63 = math.tanh %62 : vector<2x32xf32>
    %64 = arith.mulf %59, %63 : vector<2x32xf32>
    %cst_35 = arith.constant dense<0.000000e+00> : vector<2x128xf32>
    %65 = tpu.matmul %64, %17, %cst_35 {dimension_numbers = #tpu.dot_dimension_numbers<[1], [0], [0], [1], [0, 0, 1, 1], [], []>} : vector<2x32xf32>, vector<32x128xf32>, vector<2x128xf32> -> vector<2x128xf32>
    %66 = arith.addf %24, %65 : vector<2x128xf32>
    %67 = arith.negf %66 : vector<2x128xf32>
    %68 = math.exp %67 : vector<2x128xf32>
    %cst_36 = arith.constant 1.000000e+00 : f32
    %69 = vector.broadcast %cst_36 : f32 to vector<2x128xf32>
    %70 = arith.addf %69, %68 : vector<2x128xf32>
    %71 = arith.divf %69, %70 : vector<2x128xf32>
    %72 = vector.extract_strided_slice %71 {offsets = [0, 0], sizes = [2, 32], strides = [1, 1]} : vector<2x128xf32> to vector<2x32xf32>
    %73 = vector.extract_strided_slice %71 {offsets = [0, 32], sizes = [2, 32], strides = [1, 1]} : vector<2x128xf32> to vector<2x32xf32>
    %74 = vector.extract_strided_slice %71 {offsets = [0, 64], sizes = [2, 32], strides = [1, 1]} : vector<2x128xf32> to vector<2x32xf32>
    %cst_37 = arith.constant 2.000000e+00 : f32
    %75 = vector.broadcast %cst_37 : f32 to vector<2x32xf32>
    %76 = arith.mulf %75, %74 : vector<2x32xf32>
    %cst_38 = arith.constant 1.000000e+00 : f32
    %77 = vector.broadcast %cst_38 : f32 to vector<2x32xf32>
    %78 = arith.subf %76, %77 : vector<2x32xf32>
    %79 = vector.extract_strided_slice %71 {offsets = [0, 96], sizes = [2, 32], strides = [1, 1]} : vector<2x128xf32> to vector<2x32xf32>
    %80 = arith.mulf %73, %62 : vector<2x32xf32>
    %81 = arith.mulf %72, %78 : vector<2x32xf32>
    %82 = arith.addf %80, %81 : vector<2x32xf32>
    %83 = math.tanh %82 : vector<2x32xf32>
    %84 = arith.mulf %79, %83 : vector<2x32xf32>
    %cst_39 = arith.constant dense<0.000000e+00> : vector<2x128xf32>
    %85 = tpu.matmul %84, %17, %cst_39 {dimension_numbers = #tpu.dot_dimension_numbers<[1], [0], [0], [1], [0, 0, 1, 1], [], []>} : vector<2x32xf32>, vector<32x128xf32>, vector<2x128xf32> -> vector<2x128xf32>
    %86 = arith.addf %27, %85 : vector<2x128xf32>
    %87 = arith.negf %86 : vector<2x128xf32>
    %88 = math.exp %87 : vector<2x128xf32>
    %cst_40 = arith.constant 1.000000e+00 : f32
    %89 = vector.broadcast %cst_40 : f32 to vector<2x128xf32>
    %90 = arith.addf %89, %88 : vector<2x128xf32>
    %91 = arith.divf %89, %90 : vector<2x128xf32>
    %92 = vector.extract_strided_slice %91 {offsets = [0, 0], sizes = [2, 32], strides = [1, 1]} : vector<2x128xf32> to vector<2x32xf32>
    %93 = vector.extract_strided_slice %91 {offsets = [0, 32], sizes = [2, 32], strides = [1, 1]} : vector<2x128xf32> to vector<2x32xf32>
    %94 = vector.extract_strided_slice %91 {offsets = [0, 64], sizes = [2, 32], strides = [1, 1]} : vector<2x128xf32> to vector<2x32xf32>
    %cst_41 = arith.constant 2.000000e+00 : f32
    %95 = vector.broadcast %cst_41 : f32 to vector<2x32xf32>
    %96 = arith.mulf %95, %94 : vector<2x32xf32>
    %cst_42 = arith.constant 1.000000e+00 : f32
    %97 = vector.broadcast %cst_42 : f32 to vector<2x32xf32>
    %98 = arith.subf %96, %97 : vector<2x32xf32>
    %99 = vector.extract_strided_slice %91 {offsets = [0, 96], sizes = [2, 32], strides = [1, 1]} : vector<2x128xf32> to vector<2x32xf32>
    %100 = arith.mulf %93, %82 : vector<2x32xf32>
    %101 = arith.mulf %92, %98 : vector<2x32xf32>
    %102 = arith.addf %100, %101 : vector<2x32xf32>
    %103 = math.tanh %102 : vector<2x32xf32>
    %104 = arith.mulf %99, %103 : vector<2x32xf32>
    %cst_43 = arith.constant dense<0.000000e+00> : vector<2x128xf32>
    %105 = tpu.matmul %104, %17, %cst_43 {dimension_numbers = #tpu.dot_dimension_numbers<[1], [0], [0], [1], [0, 0, 1, 1], [], []>} : vector<2x32xf32>, vector<32x128xf32>, vector<2x128xf32> -> vector<2x128xf32>
    %106 = arith.addf %30, %105 : vector<2x128xf32>
    %107 = arith.negf %106 : vector<2x128xf32>
    %108 = math.exp %107 : vector<2x128xf32>
    %cst_44 = arith.constant 1.000000e+00 : f32
    %109 = vector.broadcast %cst_44 : f32 to vector<2x128xf32>
    %110 = arith.addf %109, %108 : vector<2x128xf32>
    %111 = arith.divf %109, %110 : vector<2x128xf32>
    %112 = vector.extract_strided_slice %111 {offsets = [0, 0], sizes = [2, 32], strides = [1, 1]} : vector<2x128xf32> to vector<2x32xf32>
    %113 = vector.extract_strided_slice %111 {offsets = [0, 32], sizes = [2, 32], strides = [1, 1]} : vector<2x128xf32> to vector<2x32xf32>
    %114 = vector.extract_strided_slice %111 {offsets = [0, 64], sizes = [2, 32], strides = [1, 1]} : vector<2x128xf32> to vector<2x32xf32>
    %cst_45 = arith.constant 2.000000e+00 : f32
    %115 = vector.broadcast %cst_45 : f32 to vector<2x32xf32>
    %116 = arith.mulf %115, %114 : vector<2x32xf32>
    %cst_46 = arith.constant 1.000000e+00 : f32
    %117 = vector.broadcast %cst_46 : f32 to vector<2x32xf32>
    %118 = arith.subf %116, %117 : vector<2x32xf32>
    %119 = vector.extract_strided_slice %111 {offsets = [0, 96], sizes = [2, 32], strides = [1, 1]} : vector<2x128xf32> to vector<2x32xf32>
    %120 = arith.mulf %113, %102 : vector<2x32xf32>
    %121 = arith.mulf %112, %118 : vector<2x32xf32>
    %122 = arith.addf %120, %121 : vector<2x32xf32>
    %123 = math.tanh %122 : vector<2x32xf32>
    %124 = arith.mulf %119, %123 : vector<2x32xf32>
    %cst_47 = arith.constant dense<0.000000e+00> : vector<2x128xf32>
    %125 = tpu.matmul %124, %17, %cst_47 {dimension_numbers = #tpu.dot_dimension_numbers<[1], [0], [0], [1], [0, 0, 1, 1], [], []>} : vector<2x32xf32>, vector<32x128xf32>, vector<2x128xf32> -> vector<2x128xf32>
    %126 = arith.addf %33, %125 : vector<2x128xf32>
    %127 = arith.negf %126 : vector<2x128xf32>
    %128 = math.exp %127 : vector<2x128xf32>
    %cst_48 = arith.constant 1.000000e+00 : f32
    %129 = vector.broadcast %cst_48 : f32 to vector<2x128xf32>
    %130 = arith.addf %129, %128 : vector<2x128xf32>
    %131 = arith.divf %129, %130 : vector<2x128xf32>
    %132 = vector.extract_strided_slice %131 {offsets = [0, 0], sizes = [2, 32], strides = [1, 1]} : vector<2x128xf32> to vector<2x32xf32>
    %133 = vector.extract_strided_slice %131 {offsets = [0, 32], sizes = [2, 32], strides = [1, 1]} : vector<2x128xf32> to vector<2x32xf32>
    %134 = vector.extract_strided_slice %131 {offsets = [0, 64], sizes = [2, 32], strides = [1, 1]} : vector<2x128xf32> to vector<2x32xf32>
    %cst_49 = arith.constant 2.000000e+00 : f32
    %135 = vector.broadcast %cst_49 : f32 to vector<2x32xf32>
    %136 = arith.mulf %135, %134 : vector<2x32xf32>
    %cst_50 = arith.constant 1.000000e+00 : f32
    %137 = vector.broadcast %cst_50 : f32 to vector<2x32xf32>
    %138 = arith.subf %136, %137 : vector<2x32xf32>
    %139 = vector.extract_strided_slice %131 {offsets = [0, 96], sizes = [2, 32], strides = [1, 1]} : vector<2x128xf32> to vector<2x32xf32>
    %140 = arith.mulf %133, %122 : vector<2x32xf32>
    %141 = arith.mulf %132, %138 : vector<2x32xf32>
    %142 = arith.addf %140, %141 : vector<2x32xf32>
    %143 = math.tanh %142 : vector<2x32xf32>
    %144 = arith.mulf %139, %143 : vector<2x32xf32>
    %cst_51 = arith.constant dense<0.000000e+00> : vector<2x128xf32>
    %145 = tpu.matmul %144, %17, %cst_51 {dimension_numbers = #tpu.dot_dimension_numbers<[1], [0], [0], [1], [0, 0, 1, 1], [], []>} : vector<2x32xf32>, vector<32x128xf32>, vector<2x128xf32> -> vector<2x128xf32>
    %146 = arith.addf %36, %145 : vector<2x128xf32>
    %147 = arith.negf %146 : vector<2x128xf32>
    %148 = math.exp %147 : vector<2x128xf32>
    %cst_52 = arith.constant 1.000000e+00 : f32
    %149 = vector.broadcast %cst_52 : f32 to vector<2x128xf32>
    %150 = arith.addf %149, %148 : vector<2x128xf32>
    %151 = arith.divf %149, %150 : vector<2x128xf32>
    %152 = vector.extract_strided_slice %151 {offsets = [0, 0], sizes = [2, 32], strides = [1, 1]} : vector<2x128xf32> to vector<2x32xf32>
    %153 = vector.extract_strided_slice %151 {offsets = [0, 32], sizes = [2, 32], strides = [1, 1]} : vector<2x128xf32> to vector<2x32xf32>
    %154 = vector.extract_strided_slice %151 {offsets = [0, 64], sizes = [2, 32], strides = [1, 1]} : vector<2x128xf32> to vector<2x32xf32>
    %cst_53 = arith.constant 2.000000e+00 : f32
    %155 = vector.broadcast %cst_53 : f32 to vector<2x32xf32>
    %156 = arith.mulf %155, %154 : vector<2x32xf32>
    %cst_54 = arith.constant 1.000000e+00 : f32
    %157 = vector.broadcast %cst_54 : f32 to vector<2x32xf32>
    %158 = arith.subf %156, %157 : vector<2x32xf32>
    %159 = vector.extract_strided_slice %151 {offsets = [0, 96], sizes = [2, 32], strides = [1, 1]} : vector<2x128xf32> to vector<2x32xf32>
    %160 = arith.mulf %153, %142 : vector<2x32xf32>
    %161 = arith.mulf %152, %158 : vector<2x32xf32>
    %162 = arith.addf %160, %161 : vector<2x32xf32>
    %163 = math.tanh %162 : vector<2x32xf32>
    %164 = arith.mulf %159, %163 : vector<2x32xf32>
    %cst_55 = arith.constant dense<0.000000e+00> : vector<2x128xf32>
    %165 = tpu.matmul %164, %17, %cst_55 {dimension_numbers = #tpu.dot_dimension_numbers<[1], [0], [0], [1], [0, 0, 1, 1], [], []>} : vector<2x32xf32>, vector<32x128xf32>, vector<2x128xf32> -> vector<2x128xf32>
    %166 = arith.addf %39, %165 : vector<2x128xf32>
    %167 = arith.negf %166 : vector<2x128xf32>
    %168 = math.exp %167 : vector<2x128xf32>
    %cst_56 = arith.constant 1.000000e+00 : f32
    %169 = vector.broadcast %cst_56 : f32 to vector<2x128xf32>
    %170 = arith.addf %169, %168 : vector<2x128xf32>
    %171 = arith.divf %169, %170 : vector<2x128xf32>
    %172 = vector.extract_strided_slice %171 {offsets = [0, 0], sizes = [2, 32], strides = [1, 1]} : vector<2x128xf32> to vector<2x32xf32>
    %173 = vector.extract_strided_slice %171 {offsets = [0, 32], sizes = [2, 32], strides = [1, 1]} : vector<2x128xf32> to vector<2x32xf32>
    %174 = vector.extract_strided_slice %171 {offsets = [0, 64], sizes = [2, 32], strides = [1, 1]} : vector<2x128xf32> to vector<2x32xf32>
    %cst_57 = arith.constant 2.000000e+00 : f32
    %175 = vector.broadcast %cst_57 : f32 to vector<2x32xf32>
    %176 = arith.mulf %175, %174 : vector<2x32xf32>
    %cst_58 = arith.constant 1.000000e+00 : f32
    %177 = vector.broadcast %cst_58 : f32 to vector<2x32xf32>
    %178 = arith.subf %176, %177 : vector<2x32xf32>
    %179 = vector.extract_strided_slice %171 {offsets = [0, 96], sizes = [2, 32], strides = [1, 1]} : vector<2x128xf32> to vector<2x32xf32>
    %180 = arith.mulf %173, %162 : vector<2x32xf32>
    %181 = arith.mulf %172, %178 : vector<2x32xf32>
    %182 = arith.addf %180, %181 : vector<2x32xf32>
    %183 = math.tanh %182 : vector<2x32xf32>
    %184 = arith.mulf %179, %183 : vector<2x32xf32>
    %cst_59 = arith.constant dense<0.000000e+00> : vector<2x128xf32>
    %185 = tpu.matmul %184, %17, %cst_59 {dimension_numbers = #tpu.dot_dimension_numbers<[1], [0], [0], [1], [0, 0, 1, 1], [], []>} : vector<2x32xf32>, vector<32x128xf32>, vector<2x128xf32> -> vector<2x128xf32>
    %186 = arith.addf %42, %185 : vector<2x128xf32>
    %187 = arith.negf %186 : vector<2x128xf32>
    %188 = math.exp %187 : vector<2x128xf32>
    %cst_60 = arith.constant 1.000000e+00 : f32
    %189 = vector.broadcast %cst_60 : f32 to vector<2x128xf32>
    %190 = arith.addf %189, %188 : vector<2x128xf32>
    %191 = arith.divf %189, %190 : vector<2x128xf32>
    %192 = vector.extract_strided_slice %191 {offsets = [0, 0], sizes = [2, 32], strides = [1, 1]} : vector<2x128xf32> to vector<2x32xf32>
    %193 = vector.extract_strided_slice %191 {offsets = [0, 32], sizes = [2, 32], strides = [1, 1]} : vector<2x128xf32> to vector<2x32xf32>
    %194 = vector.extract_strided_slice %191 {offsets = [0, 64], sizes = [2, 32], strides = [1, 1]} : vector<2x128xf32> to vector<2x32xf32>
    %cst_61 = arith.constant 2.000000e+00 : f32
    %195 = vector.broadcast %cst_61 : f32 to vector<2x32xf32>
    %196 = arith.mulf %195, %194 : vector<2x32xf32>
    %cst_62 = arith.constant 1.000000e+00 : f32
    %197 = vector.broadcast %cst_62 : f32 to vector<2x32xf32>
    %198 = arith.subf %196, %197 : vector<2x32xf32>
    %199 = vector.extract_strided_slice %191 {offsets = [0, 96], sizes = [2, 32], strides = [1, 1]} : vector<2x128xf32> to vector<2x32xf32>
    %200 = arith.mulf %193, %182 : vector<2x32xf32>
    %201 = arith.mulf %192, %198 : vector<2x32xf32>
    %202 = arith.addf %200, %201 : vector<2x32xf32>
    %203 = math.tanh %202 : vector<2x32xf32>
    %204 = arith.mulf %199, %203 : vector<2x32xf32>
    %c0_63 = arith.constant 0 : index
    %c0_64 = arith.constant 0 : index
    %205 = vector.load %arg5[%c0_63, %c0_64] : memref<32x128xf32, #tpu.memory_space<vmem>>, vector<32x128xf32>
    %c0_65 = arith.constant 0 : index
    %c0_66 = arith.constant 0 : index
    %206 = vector.load %arg6[%c0_65, %c0_66] : memref<32x128xf32, #tpu.memory_space<vmem>>, vector<32x128xf32>
    %c0_67 = arith.constant 0 : index
    %c0_68 = arith.constant 0 : index
    %207 = vector.load %arg7[%c0_67, %c0_68] : memref<1x128xf32, #tpu.memory_space<vmem>>, vector<1x128xf32>
    %cst_69 = arith.constant dense<0.000000e+00> : vector<2x128xf32>
    %208 = tpu.matmul %64, %205, %cst_69 {dimension_numbers = #tpu.dot_dimension_numbers<[1], [0], [0], [1], [0, 0, 1, 1], [], []>} : vector<2x32xf32>, vector<32x128xf32>, vector<2x128xf32> -> vector<2x128xf32>
    %209 = vector.broadcast %207 : vector<1x128xf32> to vector<2x128xf32>
    %210 = arith.addf %208, %209 : vector<2x128xf32>
    %cst_70 = arith.constant dense<0.000000e+00> : vector<2x128xf32>
    %211 = tpu.matmul %84, %205, %cst_70 {dimension_numbers = #tpu.dot_dimension_numbers<[1], [0], [0], [1], [0, 0, 1, 1], [], []>} : vector<2x32xf32>, vector<32x128xf32>, vector<2x128xf32> -> vector<2x128xf32>
    %212 = vector.broadcast %207 : vector<1x128xf32> to vector<2x128xf32>
    %213 = arith.addf %211, %212 : vector<2x128xf32>
    %cst_71 = arith.constant dense<0.000000e+00> : vector<2x128xf32>
    %214 = tpu.matmul %104, %205, %cst_71 {dimension_numbers = #tpu.dot_dimension_numbers<[1], [0], [0], [1], [0, 0, 1, 1], [], []>} : vector<2x32xf32>, vector<32x128xf32>, vector<2x128xf32> -> vector<2x128xf32>
    %215 = vector.broadcast %207 : vector<1x128xf32> to vector<2x128xf32>
    %216 = arith.addf %214, %215 : vector<2x128xf32>
    %cst_72 = arith.constant dense<0.000000e+00> : vector<2x128xf32>
    %217 = tpu.matmul %124, %205, %cst_72 {dimension_numbers = #tpu.dot_dimension_numbers<[1], [0], [0], [1], [0, 0, 1, 1], [], []>} : vector<2x32xf32>, vector<32x128xf32>, vector<2x128xf32> -> vector<2x128xf32>
    %218 = vector.broadcast %207 : vector<1x128xf32> to vector<2x128xf32>
    %219 = arith.addf %217, %218 : vector<2x128xf32>
    %cst_73 = arith.constant dense<0.000000e+00> : vector<2x128xf32>
    %220 = tpu.matmul %144, %205, %cst_73 {dimension_numbers = #tpu.dot_dimension_numbers<[1], [0], [0], [1], [0, 0, 1, 1], [], []>} : vector<2x32xf32>, vector<32x128xf32>, vector<2x128xf32> -> vector<2x128xf32>
    %221 = vector.broadcast %207 : vector<1x128xf32> to vector<2x128xf32>
    %222 = arith.addf %220, %221 : vector<2x128xf32>
    %cst_74 = arith.constant dense<0.000000e+00> : vector<2x128xf32>
    %223 = tpu.matmul %164, %205, %cst_74 {dimension_numbers = #tpu.dot_dimension_numbers<[1], [0], [0], [1], [0, 0, 1, 1], [], []>} : vector<2x32xf32>, vector<32x128xf32>, vector<2x128xf32> -> vector<2x128xf32>
    %224 = vector.broadcast %207 : vector<1x128xf32> to vector<2x128xf32>
    %225 = arith.addf %223, %224 : vector<2x128xf32>
    %cst_75 = arith.constant dense<0.000000e+00> : vector<2x128xf32>
    %226 = tpu.matmul %184, %205, %cst_75 {dimension_numbers = #tpu.dot_dimension_numbers<[1], [0], [0], [1], [0, 0, 1, 1], [], []>} : vector<2x32xf32>, vector<32x128xf32>, vector<2x128xf32> -> vector<2x128xf32>
    %227 = vector.broadcast %207 : vector<1x128xf32> to vector<2x128xf32>
    %228 = arith.addf %226, %227 : vector<2x128xf32>
    %cst_76 = arith.constant dense<0.000000e+00> : vector<2x128xf32>
    %229 = tpu.matmul %204, %205, %cst_76 {dimension_numbers = #tpu.dot_dimension_numbers<[1], [0], [0], [1], [0, 0, 1, 1], [], []>} : vector<2x32xf32>, vector<32x128xf32>, vector<2x128xf32> -> vector<2x128xf32>
    %230 = vector.broadcast %207 : vector<1x128xf32> to vector<2x128xf32>
    %231 = arith.addf %229, %230 : vector<2x128xf32>
    %cst_77 = arith.constant 0.000000e+00 : f32
    %232 = vector.broadcast %cst_77 : f32 to vector<2x32xf32>
    %cst_78 = arith.constant 0.000000e+00 : f32
    %233 = vector.broadcast %cst_78 : f32 to vector<2x32xf32>
    %cst_79 = arith.constant dense<0.000000e+00> : vector<2x128xf32>
    %234 = tpu.matmul %232, %206, %cst_79 {dimension_numbers = #tpu.dot_dimension_numbers<[1], [0], [0], [1], [0, 0, 1, 1], [], []>} : vector<2x32xf32>, vector<32x128xf32>, vector<2x128xf32> -> vector<2x128xf32>
    %235 = arith.addf %210, %234 : vector<2x128xf32>
    %236 = arith.negf %235 : vector<2x128xf32>
    %237 = math.exp %236 : vector<2x128xf32>
    %cst_80 = arith.constant 1.000000e+00 : f32
    %238 = vector.broadcast %cst_80 : f32 to vector<2x128xf32>
    %239 = arith.addf %238, %237 : vector<2x128xf32>
    %240 = arith.divf %238, %239 : vector<2x128xf32>
    %241 = vector.extract_strided_slice %240 {offsets = [0, 0], sizes = [2, 32], strides = [1, 1]} : vector<2x128xf32> to vector<2x32xf32>
    %242 = vector.extract_strided_slice %240 {offsets = [0, 32], sizes = [2, 32], strides = [1, 1]} : vector<2x128xf32> to vector<2x32xf32>
    %243 = vector.extract_strided_slice %240 {offsets = [0, 64], sizes = [2, 32], strides = [1, 1]} : vector<2x128xf32> to vector<2x32xf32>
    %cst_81 = arith.constant 2.000000e+00 : f32
    %244 = vector.broadcast %cst_81 : f32 to vector<2x32xf32>
    %245 = arith.mulf %244, %243 : vector<2x32xf32>
    %cst_82 = arith.constant 1.000000e+00 : f32
    %246 = vector.broadcast %cst_82 : f32 to vector<2x32xf32>
    %247 = arith.subf %245, %246 : vector<2x32xf32>
    %248 = vector.extract_strided_slice %240 {offsets = [0, 96], sizes = [2, 32], strides = [1, 1]} : vector<2x128xf32> to vector<2x32xf32>
    %249 = arith.mulf %242, %233 : vector<2x32xf32>
    %250 = arith.mulf %241, %247 : vector<2x32xf32>
    %251 = arith.addf %249, %250 : vector<2x32xf32>
    %252 = math.tanh %251 : vector<2x32xf32>
    %253 = arith.mulf %248, %252 : vector<2x32xf32>
    %cst_83 = arith.constant dense<0.000000e+00> : vector<2x128xf32>
    %254 = tpu.matmul %253, %206, %cst_83 {dimension_numbers = #tpu.dot_dimension_numbers<[1], [0], [0], [1], [0, 0, 1, 1], [], []>} : vector<2x32xf32>, vector<32x128xf32>, vector<2x128xf32> -> vector<2x128xf32>
    %255 = arith.addf %213, %254 : vector<2x128xf32>
    %256 = arith.negf %255 : vector<2x128xf32>
    %257 = math.exp %256 : vector<2x128xf32>
    %cst_84 = arith.constant 1.000000e+00 : f32
    %258 = vector.broadcast %cst_84 : f32 to vector<2x128xf32>
    %259 = arith.addf %258, %257 : vector<2x128xf32>
    %260 = arith.divf %258, %259 : vector<2x128xf32>
    %261 = vector.extract_strided_slice %260 {offsets = [0, 0], sizes = [2, 32], strides = [1, 1]} : vector<2x128xf32> to vector<2x32xf32>
    %262 = vector.extract_strided_slice %260 {offsets = [0, 32], sizes = [2, 32], strides = [1, 1]} : vector<2x128xf32> to vector<2x32xf32>
    %263 = vector.extract_strided_slice %260 {offsets = [0, 64], sizes = [2, 32], strides = [1, 1]} : vector<2x128xf32> to vector<2x32xf32>
    %cst_85 = arith.constant 2.000000e+00 : f32
    %264 = vector.broadcast %cst_85 : f32 to vector<2x32xf32>
    %265 = arith.mulf %264, %263 : vector<2x32xf32>
    %cst_86 = arith.constant 1.000000e+00 : f32
    %266 = vector.broadcast %cst_86 : f32 to vector<2x32xf32>
    %267 = arith.subf %265, %266 : vector<2x32xf32>
    %268 = vector.extract_strided_slice %260 {offsets = [0, 96], sizes = [2, 32], strides = [1, 1]} : vector<2x128xf32> to vector<2x32xf32>
    %269 = arith.mulf %262, %251 : vector<2x32xf32>
    %270 = arith.mulf %261, %267 : vector<2x32xf32>
    %271 = arith.addf %269, %270 : vector<2x32xf32>
    %272 = math.tanh %271 : vector<2x32xf32>
    %273 = arith.mulf %268, %272 : vector<2x32xf32>
    %cst_87 = arith.constant dense<0.000000e+00> : vector<2x128xf32>
    %274 = tpu.matmul %273, %206, %cst_87 {dimension_numbers = #tpu.dot_dimension_numbers<[1], [0], [0], [1], [0, 0, 1, 1], [], []>} : vector<2x32xf32>, vector<32x128xf32>, vector<2x128xf32> -> vector<2x128xf32>
    %275 = arith.addf %216, %274 : vector<2x128xf32>
    %276 = arith.negf %275 : vector<2x128xf32>
    %277 = math.exp %276 : vector<2x128xf32>
    %cst_88 = arith.constant 1.000000e+00 : f32
    %278 = vector.broadcast %cst_88 : f32 to vector<2x128xf32>
    %279 = arith.addf %278, %277 : vector<2x128xf32>
    %280 = arith.divf %278, %279 : vector<2x128xf32>
    %281 = vector.extract_strided_slice %280 {offsets = [0, 0], sizes = [2, 32], strides = [1, 1]} : vector<2x128xf32> to vector<2x32xf32>
    %282 = vector.extract_strided_slice %280 {offsets = [0, 32], sizes = [2, 32], strides = [1, 1]} : vector<2x128xf32> to vector<2x32xf32>
    %283 = vector.extract_strided_slice %280 {offsets = [0, 64], sizes = [2, 32], strides = [1, 1]} : vector<2x128xf32> to vector<2x32xf32>
    %cst_89 = arith.constant 2.000000e+00 : f32
    %284 = vector.broadcast %cst_89 : f32 to vector<2x32xf32>
    %285 = arith.mulf %284, %283 : vector<2x32xf32>
    %cst_90 = arith.constant 1.000000e+00 : f32
    %286 = vector.broadcast %cst_90 : f32 to vector<2x32xf32>
    %287 = arith.subf %285, %286 : vector<2x32xf32>
    %288 = vector.extract_strided_slice %280 {offsets = [0, 96], sizes = [2, 32], strides = [1, 1]} : vector<2x128xf32> to vector<2x32xf32>
    %289 = arith.mulf %282, %271 : vector<2x32xf32>
    %290 = arith.mulf %281, %287 : vector<2x32xf32>
    %291 = arith.addf %289, %290 : vector<2x32xf32>
    %292 = math.tanh %291 : vector<2x32xf32>
    %293 = arith.mulf %288, %292 : vector<2x32xf32>
    %cst_91 = arith.constant dense<0.000000e+00> : vector<2x128xf32>
    %294 = tpu.matmul %293, %206, %cst_91 {dimension_numbers = #tpu.dot_dimension_numbers<[1], [0], [0], [1], [0, 0, 1, 1], [], []>} : vector<2x32xf32>, vector<32x128xf32>, vector<2x128xf32> -> vector<2x128xf32>
    %295 = arith.addf %219, %294 : vector<2x128xf32>
    %296 = arith.negf %295 : vector<2x128xf32>
    %297 = math.exp %296 : vector<2x128xf32>
    %cst_92 = arith.constant 1.000000e+00 : f32
    %298 = vector.broadcast %cst_92 : f32 to vector<2x128xf32>
    %299 = arith.addf %298, %297 : vector<2x128xf32>
    %300 = arith.divf %298, %299 : vector<2x128xf32>
    %301 = vector.extract_strided_slice %300 {offsets = [0, 0], sizes = [2, 32], strides = [1, 1]} : vector<2x128xf32> to vector<2x32xf32>
    %302 = vector.extract_strided_slice %300 {offsets = [0, 32], sizes = [2, 32], strides = [1, 1]} : vector<2x128xf32> to vector<2x32xf32>
    %303 = vector.extract_strided_slice %300 {offsets = [0, 64], sizes = [2, 32], strides = [1, 1]} : vector<2x128xf32> to vector<2x32xf32>
    %cst_93 = arith.constant 2.000000e+00 : f32
    %304 = vector.broadcast %cst_93 : f32 to vector<2x32xf32>
    %305 = arith.mulf %304, %303 : vector<2x32xf32>
    %cst_94 = arith.constant 1.000000e+00 : f32
    %306 = vector.broadcast %cst_94 : f32 to vector<2x32xf32>
    %307 = arith.subf %305, %306 : vector<2x32xf32>
    %308 = vector.extract_strided_slice %300 {offsets = [0, 96], sizes = [2, 32], strides = [1, 1]} : vector<2x128xf32> to vector<2x32xf32>
    %309 = arith.mulf %302, %291 : vector<2x32xf32>
    %310 = arith.mulf %301, %307 : vector<2x32xf32>
    %311 = arith.addf %309, %310 : vector<2x32xf32>
    %312 = math.tanh %311 : vector<2x32xf32>
    %313 = arith.mulf %308, %312 : vector<2x32xf32>
    %cst_95 = arith.constant dense<0.000000e+00> : vector<2x128xf32>
    %314 = tpu.matmul %313, %206, %cst_95 {dimension_numbers = #tpu.dot_dimension_numbers<[1], [0], [0], [1], [0, 0, 1, 1], [], []>} : vector<2x32xf32>, vector<32x128xf32>, vector<2x128xf32> -> vector<2x128xf32>
    %315 = arith.addf %222, %314 : vector<2x128xf32>
    %316 = arith.negf %315 : vector<2x128xf32>
    %317 = math.exp %316 : vector<2x128xf32>
    %cst_96 = arith.constant 1.000000e+00 : f32
    %318 = vector.broadcast %cst_96 : f32 to vector<2x128xf32>
    %319 = arith.addf %318, %317 : vector<2x128xf32>
    %320 = arith.divf %318, %319 : vector<2x128xf32>
    %321 = vector.extract_strided_slice %320 {offsets = [0, 0], sizes = [2, 32], strides = [1, 1]} : vector<2x128xf32> to vector<2x32xf32>
    %322 = vector.extract_strided_slice %320 {offsets = [0, 32], sizes = [2, 32], strides = [1, 1]} : vector<2x128xf32> to vector<2x32xf32>
    %323 = vector.extract_strided_slice %320 {offsets = [0, 64], sizes = [2, 32], strides = [1, 1]} : vector<2x128xf32> to vector<2x32xf32>
    %cst_97 = arith.constant 2.000000e+00 : f32
    %324 = vector.broadcast %cst_97 : f32 to vector<2x32xf32>
    %325 = arith.mulf %324, %323 : vector<2x32xf32>
    %cst_98 = arith.constant 1.000000e+00 : f32
    %326 = vector.broadcast %cst_98 : f32 to vector<2x32xf32>
    %327 = arith.subf %325, %326 : vector<2x32xf32>
    %328 = vector.extract_strided_slice %320 {offsets = [0, 96], sizes = [2, 32], strides = [1, 1]} : vector<2x128xf32> to vector<2x32xf32>
    %329 = arith.mulf %322, %311 : vector<2x32xf32>
    %330 = arith.mulf %321, %327 : vector<2x32xf32>
    %331 = arith.addf %329, %330 : vector<2x32xf32>
    %332 = math.tanh %331 : vector<2x32xf32>
    %333 = arith.mulf %328, %332 : vector<2x32xf32>
    %cst_99 = arith.constant dense<0.000000e+00> : vector<2x128xf32>
    %334 = tpu.matmul %333, %206, %cst_99 {dimension_numbers = #tpu.dot_dimension_numbers<[1], [0], [0], [1], [0, 0, 1, 1], [], []>} : vector<2x32xf32>, vector<32x128xf32>, vector<2x128xf32> -> vector<2x128xf32>
    %335 = arith.addf %225, %334 : vector<2x128xf32>
    %336 = arith.negf %335 : vector<2x128xf32>
    %337 = math.exp %336 : vector<2x128xf32>
    %cst_100 = arith.constant 1.000000e+00 : f32
    %338 = vector.broadcast %cst_100 : f32 to vector<2x128xf32>
    %339 = arith.addf %338, %337 : vector<2x128xf32>
    %340 = arith.divf %338, %339 : vector<2x128xf32>
    %341 = vector.extract_strided_slice %340 {offsets = [0, 0], sizes = [2, 32], strides = [1, 1]} : vector<2x128xf32> to vector<2x32xf32>
    %342 = vector.extract_strided_slice %340 {offsets = [0, 32], sizes = [2, 32], strides = [1, 1]} : vector<2x128xf32> to vector<2x32xf32>
    %343 = vector.extract_strided_slice %340 {offsets = [0, 64], sizes = [2, 32], strides = [1, 1]} : vector<2x128xf32> to vector<2x32xf32>
    %cst_101 = arith.constant 2.000000e+00 : f32
    %344 = vector.broadcast %cst_101 : f32 to vector<2x32xf32>
    %345 = arith.mulf %344, %343 : vector<2x32xf32>
    %cst_102 = arith.constant 1.000000e+00 : f32
    %346 = vector.broadcast %cst_102 : f32 to vector<2x32xf32>
    %347 = arith.subf %345, %346 : vector<2x32xf32>
    %348 = vector.extract_strided_slice %340 {offsets = [0, 96], sizes = [2, 32], strides = [1, 1]} : vector<2x128xf32> to vector<2x32xf32>
    %349 = arith.mulf %342, %331 : vector<2x32xf32>
    %350 = arith.mulf %341, %347 : vector<2x32xf32>
    %351 = arith.addf %349, %350 : vector<2x32xf32>
    %352 = math.tanh %351 : vector<2x32xf32>
    %353 = arith.mulf %348, %352 : vector<2x32xf32>
    %cst_103 = arith.constant dense<0.000000e+00> : vector<2x128xf32>
    %354 = tpu.matmul %353, %206, %cst_103 {dimension_numbers = #tpu.dot_dimension_numbers<[1], [0], [0], [1], [0, 0, 1, 1], [], []>} : vector<2x32xf32>, vector<32x128xf32>, vector<2x128xf32> -> vector<2x128xf32>
    %355 = arith.addf %228, %354 : vector<2x128xf32>
    %356 = arith.negf %355 : vector<2x128xf32>
    %357 = math.exp %356 : vector<2x128xf32>
    %cst_104 = arith.constant 1.000000e+00 : f32
    %358 = vector.broadcast %cst_104 : f32 to vector<2x128xf32>
    %359 = arith.addf %358, %357 : vector<2x128xf32>
    %360 = arith.divf %358, %359 : vector<2x128xf32>
    %361 = vector.extract_strided_slice %360 {offsets = [0, 0], sizes = [2, 32], strides = [1, 1]} : vector<2x128xf32> to vector<2x32xf32>
    %362 = vector.extract_strided_slice %360 {offsets = [0, 32], sizes = [2, 32], strides = [1, 1]} : vector<2x128xf32> to vector<2x32xf32>
    %363 = vector.extract_strided_slice %360 {offsets = [0, 64], sizes = [2, 32], strides = [1, 1]} : vector<2x128xf32> to vector<2x32xf32>
    %cst_105 = arith.constant 2.000000e+00 : f32
    %364 = vector.broadcast %cst_105 : f32 to vector<2x32xf32>
    %365 = arith.mulf %364, %363 : vector<2x32xf32>
    %cst_106 = arith.constant 1.000000e+00 : f32
    %366 = vector.broadcast %cst_106 : f32 to vector<2x32xf32>
    %367 = arith.subf %365, %366 : vector<2x32xf32>
    %368 = vector.extract_strided_slice %360 {offsets = [0, 96], sizes = [2, 32], strides = [1, 1]} : vector<2x128xf32> to vector<2x32xf32>
    %369 = arith.mulf %362, %351 : vector<2x32xf32>
    %370 = arith.mulf %361, %367 : vector<2x32xf32>
    %371 = arith.addf %369, %370 : vector<2x32xf32>
    %372 = math.tanh %371 : vector<2x32xf32>
    %373 = arith.mulf %368, %372 : vector<2x32xf32>
    %cst_107 = arith.constant dense<0.000000e+00> : vector<2x128xf32>
    %374 = tpu.matmul %373, %206, %cst_107 {dimension_numbers = #tpu.dot_dimension_numbers<[1], [0], [0], [1], [0, 0, 1, 1], [], []>} : vector<2x32xf32>, vector<32x128xf32>, vector<2x128xf32> -> vector<2x128xf32>
    %375 = arith.addf %231, %374 : vector<2x128xf32>
    %376 = arith.negf %375 : vector<2x128xf32>
    %377 = math.exp %376 : vector<2x128xf32>
    %cst_108 = arith.constant 1.000000e+00 : f32
    %378 = vector.broadcast %cst_108 : f32 to vector<2x128xf32>
    %379 = arith.addf %378, %377 : vector<2x128xf32>
    %380 = arith.divf %378, %379 : vector<2x128xf32>
    %381 = vector.extract_strided_slice %380 {offsets = [0, 0], sizes = [2, 32], strides = [1, 1]} : vector<2x128xf32> to vector<2x32xf32>
    %382 = vector.extract_strided_slice %380 {offsets = [0, 32], sizes = [2, 32], strides = [1, 1]} : vector<2x128xf32> to vector<2x32xf32>
    %383 = vector.extract_strided_slice %380 {offsets = [0, 64], sizes = [2, 32], strides = [1, 1]} : vector<2x128xf32> to vector<2x32xf32>
    %cst_109 = arith.constant 2.000000e+00 : f32
    %384 = vector.broadcast %cst_109 : f32 to vector<2x32xf32>
    %385 = arith.mulf %384, %383 : vector<2x32xf32>
    %cst_110 = arith.constant 1.000000e+00 : f32
    %386 = vector.broadcast %cst_110 : f32 to vector<2x32xf32>
    %387 = arith.subf %385, %386 : vector<2x32xf32>
    %388 = vector.extract_strided_slice %380 {offsets = [0, 96], sizes = [2, 32], strides = [1, 1]} : vector<2x128xf32> to vector<2x32xf32>
    %389 = arith.mulf %382, %371 : vector<2x32xf32>
    %390 = arith.mulf %381, %387 : vector<2x32xf32>
    %391 = arith.addf %389, %390 : vector<2x32xf32>
    %392 = math.tanh %391 : vector<2x32xf32>
    %393 = arith.mulf %388, %392 : vector<2x32xf32>
    %c0_111 = arith.constant 0 : index
    %c0_112 = arith.constant 0 : index
    %394 = vector.load %arg8[%c0_111, %c0_112] : memref<32x9xf32, #tpu.memory_space<vmem>>, vector<32x9xf32>
    %cst_113 = arith.constant dense<0.000000e+00> : vector<2x9xf32>
    %395 = tpu.matmul %393, %394, %cst_113 {dimension_numbers = #tpu.dot_dimension_numbers<[1], [0], [0], [1], [0, 0, 1, 1], [], []>} : vector<2x32xf32>, vector<32x9xf32>, vector<2x9xf32> -> vector<2x9xf32>
    %c0_114 = arith.constant 0 : index
    %c0_115 = arith.constant 0 : index
    %396 = vector.load %arg9[%c0_114, %c0_115] : memref<1x9xf32, #tpu.memory_space<vmem>>, vector<1x9xf32>
    %397 = vector.broadcast %396 : vector<1x9xf32> to vector<2x9xf32>
    %398 = arith.addf %395, %397 : vector<2x9xf32>
    %c0_116 = arith.constant 0 : index
    %c0_117 = arith.constant 0 : index
    %399 = vector.load %arg10[%c0_116, %c0_117] : memref<2x9xf32, #tpu.memory_space<vmem>>, vector<2x9xf32>
    tpu.vector_store %arg10[%c0_116, %c0_117], %398 {strides = array<i32>} : memref<2x9xf32, #tpu.memory_space<vmem>>, vector<2x9xf32>,
    return
  }
  func.func @transform_0(%arg0: i32) -> (i32, i32, i32) {
    %c0_i32 = arith.constant 0 : i32
    %c0_i32_0 = arith.constant 0 : i32
    %c0_i32_1 = arith.constant 0 : i32
    %c0_i32_2 = arith.constant 0 : i32
    return %c0_i32, %c0_i32_0, %c0_i32_1 : i32, i32, i32
  }
  func.func @transform_1(%arg0: i32) -> (i32, i32) {
    %c0_i32 = arith.constant 0 : i32
    %c0_i32_0 = arith.constant 0 : i32
    %c0_i32_1 = arith.constant 0 : i32
    return %c0_i32, %c0_i32_0 : i32, i32
  }
  func.func @transform_2(%arg0: i32) -> (i32, i32) {
    %c0_i32 = arith.constant 0 : i32
    %c0_i32_0 = arith.constant 0 : i32
    %c0_i32_1 = arith.constant 0 : i32
    return %c0_i32, %c0_i32_0 : i32, i32
  }
  func.func @transform_3(%arg0: i32) -> (i32, i32) {
    %c0_i32 = arith.constant 0 : i32
    %c0_i32_0 = arith.constant 0 : i32
    %c0_i32_1 = arith.constant 0 : i32
    return %c0_i32, %c0_i32_0 : i32, i32
  }
  func.func @transform_4(%arg0: i32) -> (i32, i32) {
    %c0_i32 = arith.constant 0 : i32
    %c0_i32_0 = arith.constant 0 : i32
    %c0_i32_1 = arith.constant 0 : i32
    return %c0_i32, %c0_i32_0 : i32, i32
  }
  func.func @transform_5(%arg0: i32) -> (i32, i32) {
    %c0_i32 = arith.constant 0 : i32
    %c0_i32_0 = arith.constant 0 : i32
    %c0_i32_1 = arith.constant 0 : i32
    return %c0_i32, %c0_i32_0 : i32, i32
  }
  func.func @transform_6(%arg0: i32) -> (i32, i32) {
    %c0_i32 = arith.constant 0 : i32
    %c0_i32_0 = arith.constant 0 : i32
    %c0_i32_1 = arith.constant 0 : i32
    return %c0_i32, %c0_i32_0 : i32, i32
  }
  func.func @transform_7(%arg0: i32) -> (i32, i32) {
    %c0_i32 = arith.constant 0 : i32
    %c0_i32_0 = arith.constant 0 : i32
    %c0_i32_1 = arith.constant 0 : i32
    return %c0_i32, %c0_i32_0 : i32, i32
  }
  func.func @transform_8(%arg0: i32) -> (i32, i32) {
    %c0_i32 = arith.constant 0 : i32
    %c0_i32_0 = arith.constant 0 : i32
    %c0_i32_1 = arith.constant 0 : i32
    return %c0_i32, %c0_i32_0 : i32, i32
  }
  func.func @transform_9(%arg0: i32) -> (i32, i32) {
    %c0_i32 = arith.constant 0 : i32
    %c0_i32_0 = arith.constant 0 : i32
    %c0_i32_1 = arith.constant 0 : i32
    return %c0_i32, %c0_i32_0 : i32, i32
  }
}

</mosaic_0001>

<bundles_post_ra>
// kernel: lstm_model_forward.1
= control target key start
LH: loop header
LB: loop body
LE: loop exit
PB: predicated region body
PF: predicated region fallthrough
CT: control target
= control target key end

     0   :  { %14 = vsyncpa [#allocation3], 0  ;;  %s4381_s0 = inlined_call_operand.vmem [shape: f32[8,2,16], index: 0, kind: input, shape index: {}]   ;;  %s4382_s1 = inlined_call_operand.hbm [shape: f32[16,128], index: 1, kind: input, shape index: {}]   ;;  %s4383_s2 = inlined_call_operand.vmem [shape: f32[32,128], index: 2, kind: input, shape index: {}]   ;;  %s4384_s3 = inlined_call_operand.vmem [shape: f32[1,128], index: 3, kind: input, shape index: {}]   ;;  %s4385_s4 = inlined_call_operand.vmem [shape: f32[32,128], index: 4, kind: input, shape index: {}]   ;;  %s4386_s5 = inlined_call_operand.vmem [shape: f32[32,128], index: 5, kind: input, shape index: {}]   ;;  %s4387_s6 = inlined_call_operand.vmem [shape: f32[1,128], index: 6, kind: input, shape index: {}]   ;;  %s4388_s7 = inlined_call_operand.vmem [shape: f32[32,9], index: 7, kind: input, shape index: {}]   ;;  %s4389_s8 = inlined_call_operand.hbm [shape: f32[1,9], index: 8, kind: input, shape index: {}]   ;;  %s4390_s9 = inlined_call_operand.vmem [shape: f32[2,9], index: 9, kind: output, shape index: {}]  }
   0x1   :  { %15 = vsyncpa [#allocation5], 0  ;;  %s3882_s30 = smov [#allocation2]   ;;  %s3834_s13 = scalar_lea.hbm %s4382_s1, 256 }
   0x2   :  { %s23_s10 = sshll.u32 %s3882_s30, 4  ;;  %p3835_p0 = scmp.ne.s32.totalorder %s4382_s1, %s3834_s13  ;;  %s24_s10 = int_to_ptr.vmem [resolvable:$true] %s23_s10 }
   0x3   :  { %p3838_p1 = scmp.lt.u32.totalorder %s3834_s13, %s4382_s1 }
   0x5   :  { %p3840_p2 = pnand %p3838_p1, %p3835_p0 }
   0x7   :  { %3843 = shalt.err (!%p3840_p2)
}
   0x8   :  { %s3844_s18 = scalar_lea.vmem %s24_s10, 256  ;;  %p3849_p4 = scmp.lt.s32.totalorder %s24_s10, %s24_s10 }
   0x9   :  { %p3845_p3 = scmp.ne.s32.totalorder %s24_s10, %s3844_s18  ;;  %p3850_p5 = scmp.lt.s32.totalorder %s3844_s18, %s3844_s18 }
   0xb   :  { %p3851_p6 = por %p3850_p5, %p3849_p4 }
   0xd   :  { %p3852_p7 = pnand %p3851_p6, %p3845_p3 }
   0xf   :  { %3855 = shalt.err (!%p3852_p7)
}
  0x10   :  { %s3883_s19 = smov 128   ;;  %s3884_s20 = smov 8  }
  0x11   :  { %29 = dma.hbm_to_vmem [thread:$0]  %s4382_s1, 256, %s24_s10, [#allocation3], %s3883_s19, %s3883_s19, %s3884_s20  }
  0x12   :  { %s3885_s23 = smov [#allocation4]   ;;  %s3856_s27 = scalar_lea.hbm %s4389_s8, 16 }
  0x13   :  { %s48_s24 = sshll.u32 %s3885_s23, 4  ;;  %p3857_p8 = scmp.ne.s32.totalorder %s4389_s8, %s3856_s27  ;;  %s49_s24 = int_to_ptr.vmem [resolvable:$true] %s48_s24 }
  0x14   :  { %p3860_p9 = scmp.lt.u32.totalorder %s3856_s27, %s4389_s8 }
  0x16   :  { %p3862_p10 = pnand %p3860_p9, %p3857_p8 }
  0x18   :  { %3865 = shalt.err (!%p3862_p10)
}
  0x19   :  { %s3866_s12 = scalar_lea.vmem %s49_s24, 16  ;;  %s3870_s1 = scalar_lea.vmem %s49_s24, 32 }
  0x1a   :  { %p3867_p11 = scmp.ne.s32.totalorder %s49_s24, %s3866_s12  ;;  %p3871_p12 = scmp.lt.s32.totalorder %s49_s24, %s49_s24 }
  0x1b   :  { %p3872_p13 = scmp.lt.s32.totalorder %s3870_s1, %s3866_s12 }
  0x1d   :  { %p3873_p0 = por %p3872_p13, %p3871_p12 }
  0x1f   :  { %p3874_p1 = pnand %p3873_p0, %p3867_p11 }
  0x21   :  { %3877 = shalt.err (!%p3874_p1)
}
  0x22   :  { %51 = dma.hbm_to_vmem [thread:$0]  %s4389_s8, 16, %s49_s24, [#allocation5]  }
  0x23   :  { %3878 = dma.done.wait [#allocation3], 256  }
  0x24   :  { %3879 = vsyncadd [#allocation3], 4294967040 }
  0x25   :  { %3880 = dma.done.wait [#allocation5], 16  }
  0x26   :  { %3881 = vsyncadd [#allocation5], 4294967280  ;;  %v3886_v0 = vmov 0.0|0.0   ;;  %vm3887_vm0 = vmmov 0   ;;  %v3888_v1 = vmov 0.0   ;;  %v73_v2 = vld [vmem:[#allocation2] sm:$0xff] }
  0x27   :  { %3514 = vmatprep.subr.bf16.mxu0 %v3886_v0  ;;  %3195 = vmatprep.mubr.msk.f32.mxu0 %vm3887_vm0, %v3888_v1  ;;  %v74_v3 = vld [vmem:[#allocation2 + $0x8] sm:$0xff]  ;;  %v2956_v5 = vld [vmem:[%s4381_s0 + $0x4] sm:$0x3]  ;;  %vm86_vm1 = vcmask 130048   ;;  %v58_v6 = vld [vmem:[%s4381_s0] sm:$0x3] }
  0x28   :  { %3508 = vmatprep.subr.bf16.mxu1 %v3886_v0  ;;  %3181 = vmatprep.mubr.msk.f32.mxu1 %vm3887_vm0, %v3888_v1  ;;  %v3971_v4 = vpack.c.bf16 %v74_v3, %v73_v2  ;;  %v2958_v7 = vld [vmem:[%s4381_s0 + $0x8] sm:$0x3]  ;;  %v75_v8 = vld [vmem:[%s4383_s2] sm:$0xff]  ;;  %v2960_v10 = vld [vmem:[%s4381_s0 + $0xc] sm:$0x3]  ;;  %s3889_s30 = smov 64  }
  0x29   :  { %v76_v9 = vld [vmem:[%s4383_s2 + $0x8] sm:$0xff]  ;;  %v77_v12 = vld [vmem:[%s4383_s2 + $0x10] sm:$0xff]  ;;  %v78_v13 = vld [vmem:[%s4383_s2 + $0x18] sm:$0xff]  ;;  %vm671_vm2 = vcmask 261120   ;;  %vm2947_vm3 = vcmask 66560  }
  0x2a   :  { %3516 = vmatpush3.bf16.msra.mxu0 %v3971_v4  ;;  %3510 = vmatpush3.bf16.msra.mxu1 %v3971_v4  ;;  %v4009_v11 = vpack.c.bf16 %v76_v9, %v75_v8  ;;  %v4020_v14 = vpack.c.bf16 %v78_v13, %v77_v12  ;;  %v4037_v17 = vld [vmem:[%s4384_s3] ss:$0 sm:$0xff]  ;;  %s3890_s3 = smov 32   ;;  %v2955_v33 = vld [vmem:[%s4381_s0 + $0x2] sm:$0x3] }
  0x2b   :  { %3520 = vmatprep.subr.bf16.mxu0 %v3886_v0  ;;  %3511 = vmatprep.subr.bf16.mxu1 %v3886_v0  ;;  %v2957_v34 = vld [vmem:[%s4381_s0 + $0x6] sm:$0x3]  ;;  %v2959_v35 = vld [vmem:[%s4381_s0 + $0xa] sm:$0x3]  ;;  %v2961_v37 = vld [vmem:[%s4381_s0 + $0xe] sm:$0x3] }
  0x2d   :  { %3196 = vmatmul.mubr.msk.f32.vlgmr.msra.gmra.mrb[0].mxu0 %vm86_vm1, %v2956_v5  ;;  %3182 = vmatmul.mubr.msk.f32.vlgmr.msra.gmra.mrb[0].mxu1 %vm86_vm1, %v58_v6 }
  0x2e   :  { %3522 = vmatpush3.bf16.msra.mxu0 %v3971_v4  ;;  %3209 = vmatprep.mubr.msk.f32.mxu0 %vm3887_vm0, %v3888_v1 }
  0x2f   :  { %3526 = vmatprep.subr.bf16.mxu0 %v3886_v0  ;;  %3513 = vmatpush3.bf16.msra.mxu1 %v3971_v4 }
  0x30   :  { %3188 = vmatprep.mubr.msk.f32.mxu1 %vm3887_vm0, %v3888_v1  ;;  %3517 = vmatprep.subr.bf16.mxu1 %v3886_v0 }
  0x31   :  { %3210 = vmatmul.mubr.msk.f32.vlgmr.msra.gmra.mrb[2].mxu0 %vm86_vm1, %v2958_v7 }
  0x32   :  { %3528 = vmatpush3.bf16.msra.mxu0 %v3971_v4  ;;  %3223 = vmatprep.mubr.msk.f32.mxu0 %vm3887_vm0, %v3888_v1 }
  0x33   :  { %3532 = vmatprep.subr.bf16.mxu0 %v3886_v0  ;;  %3189 = vmatmul.mubr.msk.f32.vlgmr.msra.gmra.mrb[2].mxu1 %vm86_vm1, %v2955_v33 }
  0x34   :  { %3519 = vmatpush3.bf16.msra.mxu1 %v3971_v4  ;;  %3202 = vmatprep.mubr.msk.f32.mxu1 %vm3887_vm0, %v3888_v1 }
  0x35   :  { %3224 = vmatmul.mubr.msk.f32.vlgmr.msra.gmra.mrb[4].mxu0 %vm86_vm1, %v2960_v10  ;;  %3523 = vmatprep.subr.bf16.mxu1 %v3886_v0 }
  0x36   :  { %3534 = vmatpush3.bf16.msra.mxu0 %v4009_v11  ;;  %3241 = vmatprep.mubr.msk.f32.mxu0 %vm3887_vm0, %v3888_v1 }
  0x37   :  { %3535 = vmatprep.subr.bf16.mxu0 %v3886_v0  ;;  %3203 = vmatmul.mubr.msk.f32.vlgmr.msra.gmra.mrb[4].mxu1 %vm86_vm1, %v2957_v34 }
  0x38   :  { %3525 = vmatpush3.bf16.msra.mxu1 %v3971_v4  ;;  %3216 = vmatprep.mubr.msk.f32.mxu1 %vm3887_vm0, %v3888_v1 }
  0x39   :  { %3529 = vmatprep.subr.bf16.mxu1 %v3886_v0 }
  0x3a   :  { %3537 = vmatpush3.bf16.msra.mxu0 %v4020_v14 }
  0x3b   :  { %3544 = vmatprep.subr.bf16.mxu0 %v3886_v0  ;;  %3217 = vmatmul.mubr.msk.f32.vlgmr.msra.gmra.mrb[6].mxu1 %vm86_vm1, %v2959_v35 }
  0x3c   :  { %3531 = vmatpush3.bf16.msra.mxu1 %v3971_v4  ;;  %3230 = vmatprep.mubr.msk.f32.mxu1 %vm3887_vm0, %v3888_v1 }
  0x3d   :  { %3242 = vmatmul.mubr.f32.vlgmr.msra.gmra.mrb[6].mxu0 %v3888_v1  ;;  %3538 = vmatprep.subr.bf16.mxu1 %v3886_v0 }
  0x3e   :  { %3546 = vmatpush3.bf16.msra.mxu0 %v4009_v11  ;;  %3263 = vmatprep.mubr.msk.f32.mxu0 %vm3887_vm0, %v3888_v1 }
  0x3f   :  { %3547 = vmatprep.subr.bf16.mxu0 %v3886_v0  ;;  %3231 = vmatmul.mubr.msk.f32.vlgmr.msra.gmra.mrb[8].mxu1 %vm86_vm1, %v2961_v37 }
  0x40   :  { %3540 = vmatpush3.bf16.msra.mxu1 %v4009_v11  ;;  %3252 = vmatprep.mubr.msk.f32.mxu1 %vm3887_vm0, %v3888_v1 }
  0x41   :  { %3541 = vmatprep.subr.bf16.mxu1 %v3886_v0 }
  0x42   :  { %3549 = vmatpush3.bf16.msra.mxu0 %v4020_v14 }
  0x43   :  { %3556 = vmatprep.subr.bf16.mxu0 %v3886_v0 }
  0x44   :  { %3543 = vmatpush3.bf16.msra.mxu1 %v4020_v14 }
  0x45   :  { %3550 = vmatprep.subr.bf16.mxu1 %v3886_v0 }
 0x100   :  { %v156_v15 = vpop.f32.mrb[0].mxu1 }
 0x101   :  { %v3183_v16 = vpop.f32.mrb[1].mxu1  ;;  %v157_v18 = vadd.f32 %v4037_v17, %v156_v15 }
 0x110   :  { %v741_v19 = vpop.f32.mrb[6].mxu0 }
 0x111   :  { %v745_v20 = vadd.f32 %v741_v19, %v157_v18  ;;  %v3243_v21 = vpop.f32.mrb[7].mxu0 }
 0x113   :  { %v2971_v22 = vmul.f32 -1.442695, %v745_v20 }
 0x115   :  { %3738 = vpow2.f32 %v2971_v22 }
 0x11f   :  { %v3739_v23 = vpop.eup %3738 }
 0x120   :  { %v749_v24 = vadd.f32 1.0, %v3739_v23 }
 0x122   :  { %3740 = vrcp.f32 %v749_v24 }
 0x12c   :  { %v3741_v25 = vpop.eup %3740 }
 0x12d   :  { %v752_v26 = vmul.f32 2.0, %v3741_v25  ;;  %v754_v30 = vmul.f32 0.0, %v3741_v25 }
 0x12f   :  { %v2972_v27 = vadd.f32 -1.0, %v752_v26 }
 0x131   :  { %756 = vrot.lane.b32.xlu0 %v2972_v27, %s3889_s30 }
 0x1a3   :  { %v757_v28 = vpop.permute.xlu0 %756 }
 0x1a4   :  { %v759_v29 = vmul.f32 %v3741_v25, %v757_v28 }
 0x1a6   :  { %761 = vrot.lane.b32.xlu0 %v759_v29, %s3890_s3 }
 0x218   :  { %v762_v31 = vpop.permute.xlu0 %761 }
 0x219   :  { %v764_v32 = vadd.f32 %v762_v31, %v754_v30 }
 0x21b   :  { %3742 = vtanh.f32 %v764_v32 }
 0x225   :  { %v3743_v36 = vpop.eup %3742 }
 0x226   :  { %767 = vrot.lane.b32.xlu1 %v3743_v36, %s3889_s30 }
 0x298   :  { %v768_v38 = vpop.permute.xlu1 %767 }
 0x299   :  { %v770_v39 = vmul.f32 %v3741_v25, %v768_v38 }
 0x29b   :  { %772 = vrot.lane.b32.xlu1 %v770_v39, %s3890_s3 }
 0x30d   :  { %v4078_v40 = vpop.permute.xlu1 %772 }
 0x30e   :  { %3253 = vmatmul.mubr.msk.f32.vlgmr.msra.gmra.mrb[2].mxu1 %vm671_vm2, %v4078_v40 }
 0x30f   :  { %3552 = vmatpush3.bf16.msra.mxu1 %v4009_v11  ;;  %3274 = vmatprep.mubr.msk.f32.mxu1 %vm3887_vm0, %v3888_v1 }
 0x310   :  { %3553 = vmatprep.subr.bf16.mxu1 %v3886_v0 }
 0x313   :  { %3555 = vmatpush3.bf16.msra.mxu1 %v4020_v14 }
 0x314   :  { %3562 = vmatprep.subr.bf16.mxu1 %v3886_v0 }
 0x3e1   :  { %v842_v41 = vpop.f32.mrb[2].mxu1 }
 0x3e2   :  { %v3684_v42 = vadd.f32 %v4037_v17, %v842_v41  ;;  %v3254_v43 = vpop.f32.mrb[3].mxu1 }
 0x3e4   :  { %v2974_v44 = vmul.f32 -1.442695, %v3684_v42 }
 0x3e6   :  { %3744 = vpow2.f32 %v2974_v44 }
 0x3f0   :  { %v3745_v45 = vpop.eup %3744 }
 0x3f1   :  { %v850_v46 = vadd.f32 1.0, %v3745_v45 }
 0x3f3   :  { %3746 = vrcp.f32 %v850_v46 }
 0x3fd   :  { %v3747_v47 = vpop.eup %3746 }
 0x3fe   :  { %v853_v48 = vmul.f32 2.0, %v3747_v47  ;;  %v855_v52 = vmul.f32 %v3747_v47, %v764_v32 }
 0x400   :  { %v2975_v49 = vadd.f32 -1.0, %v853_v48 }
 0x402   :  { %857 = vrot.lane.b32.xlu0 %v2975_v49, %s3889_s30 }
 0x474   :  { %v858_v50 = vpop.permute.xlu0 %857 }
 0x475   :  { %v860_v51 = vmul.f32 %v3747_v47, %v858_v50 }
 0x477   :  { %862 = vrot.lane.b32.xlu1 %v860_v51, %s3890_s3 }
 0x4e9   :  { %v863_v53 = vpop.permute.xlu1 %862 }
 0x4ea   :  { %v865_v54 = vadd.f32 %v863_v53, %v855_v52 }
 0x4ec   :  { %3748 = vtanh.f32 %v865_v54 }
 0x4f6   :  { %v3749_v55 = vpop.eup %3748 }
 0x4f7   :  { %868 = vrot.lane.b32.xlu0 %v3749_v55, %s3889_s30 }
 0x569   :  { %v869_v56 = vpop.permute.xlu0 %868 }
 0x56a   :  { %v871_v57 = vmul.f32 %v3747_v47, %v869_v56 }
 0x56c   :  { %873 = vrot.lane.b32.xlu1 %v871_v57, %s3890_s3 }
 0x5de   :  { %v4093_v58 = vpop.permute.xlu1 %873 }
 0x5df   :  { %3264 = vmatmul.mubr.msk.f32.vlgmr.msra.gmra.mrb[0].mxu0 %vm671_vm2, %v4093_v58 }
 0x5e0   :  { %3558 = vmatpush3.bf16.msra.mxu0 %v4009_v11  ;;  %3285 = vmatprep.mubr.msk.f32.mxu0 %vm3887_vm0, %v3888_v1 }
 0x5e1   :  { %3559 = vmatprep.subr.bf16.mxu0 %v3886_v0 }
 0x5e4   :  { %3561 = vmatpush3.bf16.msra.mxu0 %v4020_v14 }
 0x5e5   :  { %3568 = vmatprep.subr.bf16.mxu0 %v3886_v0 }
 0x6b2   :  { %v943_v59 = vpop.f32.mrb[0].mxu0 }
 0x6b3   :  { %v3685_v60 = vadd.f32 %v4037_v17, %v943_v59  ;;  %v3265_v61 = vpop.f32.mrb[1].mxu0 }
 0x6b5   :  { %v2977_v62 = vmul.f32 -1.442695, %v3685_v60 }
 0x6b7   :  { %3750 = vpow2.f32 %v2977_v62 }
 0x6c1   :  { %v3751_v63 = vpop.eup %3750 }
 0x6c2   :  { %v951_v2 = vadd.f32 1.0, %v3751_v63 }
 0x6c4   :  { %3752 = vrcp.f32 %v951_v2 }
 0x6ce   :  { %v3753_v3 = vpop.eup %3752 }
 0x6cf   :  { %v954_v4 = vmul.f32 2.0, %v3753_v3  ;;  %v956_v8 = vmul.f32 %v3753_v3, %v865_v54 }
 0x6d1   :  { %v2978_v5 = vadd.f32 -1.0, %v954_v4 }
 0x6d3   :  { %958 = vrot.lane.b32.xlu0 %v2978_v5, %s3889_s30 }
 0x745   :  { %v959_v6 = vpop.permute.xlu0 %958 }
 0x746   :  { %v961_v7 = vmul.f32 %v3753_v3, %v959_v6 }
 0x748   :  { %963 = vrot.lane.b32.xlu1 %v961_v7, %s3890_s3 }
 0x7ba   :  { %v964_v9 = vpop.permute.xlu1 %963 }
 0x7bb   :  { %v966_v10 = vadd.f32 %v964_v9, %v956_v8  ;;  %v1478_v9 = vld [vmem:[%s4385_s4] sm:$0xff] }
 0x7bd   :  { %3754 = vtanh.f32 %v966_v10 }
 0x7c7   :  { %v3755_v12 = vpop.eup %3754 }
 0x7c8   :  { %969 = vrot.lane.b32.xlu0 %v3755_v12, %s3889_s30 }
 0x83a   :  { %v970_v13 = vpop.permute.xlu0 %969 }
 0x83b   :  { %v972_v15 = vmul.f32 %v3753_v3, %v970_v13  ;;  %v1480_v13 = vld [vmem:[%s4385_s4 + $0x10] sm:$0xff] }
 0x83d   :  { %974 = vrot.lane.b32.xlu1 %v972_v15, %s3890_s3  ;;  %v1481_v15 = vld [vmem:[%s4385_s4 + $0x18] sm:$0xff] }
 0x8af   :  { %v4108_v16 = vpop.permute.xlu1 %974 }
 0x8b0   :  { %3275 = vmatmul.mubr.msk.f32.vlgmr.msra.gmra.mrb[4].mxu1 %vm671_vm2, %v4108_v16 }
 0x8b1   :  { %3564 = vmatpush3.bf16.msra.mxu1 %v4009_v11  ;;  %3296 = vmatprep.mubr.msk.f32.mxu1 %vm3887_vm0, %v3888_v1 }
 0x8b2   :  { %3565 = vmatprep.subr.bf16.mxu1 %v3886_v0 }
 0x8b5   :  { %3567 = vmatpush3.bf16.msra.mxu1 %v4020_v14 }
 0x8b6   :  { %3574 = vmatprep.subr.bf16.mxu1 %v3886_v0 }
 0x983   :  { %v1044_v18 = vpop.f32.mrb[4].mxu1 }
 0x984   :  { %v3686_v19 = vadd.f32 %v4037_v17, %v1044_v18  ;;  %v3276_v20 = vpop.f32.mrb[5].mxu1 }
 0x986   :  { %v2980_v21 = vmul.f32 -1.442695, %v3686_v19  ;;  %v4169_v19 = vpack.c.bf16 %v1481_v15, %v1480_v13 }
 0x988   :  { %3756 = vpow2.f32 %v2980_v21 }
 0x992   :  { %v3757_v22 = vpop.eup %3756 }
 0x993   :  { %v1052_v23 = vadd.f32 1.0, %v3757_v22 }
 0x995   :  { %3758 = vrcp.f32 %v1052_v23 }
 0x99f   :  { %v3759_v24 = vpop.eup %3758 }
 0x9a0   :  { %v1055_v25 = vmul.f32 2.0, %v3759_v24  ;;  %v1057_v29 = vmul.f32 %v3759_v24, %v966_v10  ;;  %v1479_v10 = vld [vmem:[%s4385_s4 + $0x8] sm:$0xff] }
 0x9a1   :  { %v4156_v12 = vpack.c.bf16 %v1479_v10, %v1478_v9 }
 0x9a2   :  { %v2981_v26 = vadd.f32 -1.0, %v1055_v25 }
 0x9a4   :  { %1059 = vrot.lane.b32.xlu0 %v2981_v26, %s3889_s30 }
 0xa16   :  { %v1060_v27 = vpop.permute.xlu0 %1059 }
 0xa17   :  { %v1062_v28 = vmul.f32 %v3759_v24, %v1060_v27 }
 0xa19   :  { %1064 = vrot.lane.b32.xlu1 %v1062_v28, %s3890_s3 }
 0xa8b   :  { %v1065_v30 = vpop.permute.xlu1 %1064 }
 0xa8c   :  { %v1067_v31 = vadd.f32 %v1065_v30, %v1057_v29 }
 0xa8e   :  { %3760 = vtanh.f32 %v1067_v31 }
 0xa98   :  { %v3761_v32 = vpop.eup %3760 }
 0xa99   :  { %1070 = vrot.lane.b32.xlu0 %v3761_v32, %s3889_s30 }
 0xb0b   :  { %v1071_v33 = vpop.permute.xlu0 %1070 }
 0xb0c   :  { %v1073_v34 = vmul.f32 %v3759_v24, %v1071_v33 }
 0xb0e   :  { %1075 = vrot.lane.b32.xlu1 %v1073_v34, %s3890_s3 }
 0xb80   :  { %v4123_v35 = vpop.permute.xlu1 %1075 }
 0xb81   :  { %3286 = vmatmul.mubr.msk.f32.vlgmr.msra.gmra.mrb[2].mxu0 %vm671_vm2, %v4123_v35 }
 0xb82   :  { %3570 = vmatpush3.bf16.msra.mxu0 %v4009_v11  ;;  %3307 = vmatprep.mubr.msk.f32.mxu0 %vm3887_vm0, %v3888_v1 }
 0xb83   :  { %3571 = vmatprep.subr.bf16.mxu0 %v3886_v0 }
 0xb86   :  { %3573 = vmatpush3.bf16.msra.mxu0 %v4020_v14 }
 0xb87   :  { %3580 = vmatprep.subr.bf16.mxu0 %v3886_v0 }
 0xc54   :  { %v1145_v36 = vpop.f32.mrb[2].mxu0 }
 0xc55   :  { %v3687_v37 = vadd.f32 %v4037_v17, %v1145_v36  ;;  %v3287_v38 = vpop.f32.mrb[3].mxu0  ;;  %v1482_v36 = vld [vmem:[%s4386_s5] sm:$0xff] }
 0xc57   :  { %v2983_v39 = vmul.f32 -1.442695, %v3687_v37  ;;  %v1483_v37 = vld [vmem:[%s4386_s5 + $0x8] sm:$0xff] }
 0xc58   :  { %v4213_v38 = vpack.c.bf16 %v1483_v37, %v1482_v36 }
 0xc59   :  { %3762 = vpow2.f32 %v2983_v39  ;;  %v1484_v39 = vld [vmem:[%s4386_s5 + $0x10] sm:$0xff] }
 0xc63   :  { %v3763_v41 = vpop.eup %3762 }
 0xc64   :  { %v1153_v42 = vadd.f32 1.0, %v3763_v41  ;;  %v1485_v41 = vld [vmem:[%s4386_s5 + $0x18] sm:$0xff] }
 0xc66   :  { %3764 = vrcp.f32 %v1153_v42 }
 0xc70   :  { %v3765_v43 = vpop.eup %3764 }
 0xc71   :  { %v1156_v44 = vmul.f32 2.0, %v3765_v43  ;;  %v1158_v48 = vmul.f32 %v3765_v43, %v1067_v31 }
 0xc73   :  { %v2984_v45 = vadd.f32 -1.0, %v1156_v44 }
 0xc75   :  { %1160 = vrot.lane.b32.xlu0 %v2984_v45, %s3889_s30 }
 0xce7   :  { %v1161_v46 = vpop.permute.xlu0 %1160 }
 0xce8   :  { %v1163_v47 = vmul.f32 %v3765_v43, %v1161_v46  ;;  %v4272_v46 = vld [vmem:[%s4387_s6] ss:$0 sm:$0xff] }
 0xcea   :  { %1165 = vrot.lane.b32.xlu1 %v1163_v47, %s3890_s3 }
 0xd5c   :  { %v1166_v49 = vpop.permute.xlu1 %1165 }
 0xd5d   :  { %v1168_v50 = vadd.f32 %v1166_v49, %v1158_v48 }
 0xd5f   :  { %3766 = vtanh.f32 %v1168_v50 }
 0xd69   :  { %v3767_v51 = vpop.eup %3766 }
 0xd6a   :  { %1171 = vrot.lane.b32.xlu0 %v3767_v51, %s3889_s30 }
 0xddc   :  { %v1172_v52 = vpop.permute.xlu0 %1171 }
 0xddd   :  { %v1174_v53 = vmul.f32 %v3765_v43, %v1172_v52  ;;  %v4225_v43 = vpack.c.bf16 %v1485_v41, %v1484_v39 }
 0xddf   :  { %1176 = vrot.lane.b32.xlu1 %v1174_v53, %s3890_s3 }
 0xe51   :  { %v1177_v54 = vpop.permute.xlu1 %1176 }
 0xe52   :  { %3297 = vmatmul.mubr.msk.f32.vlgmr.msra.gmra.mrb[6].mxu1 %vm671_vm2, %v1177_v54 }
 0xe53   :  { %3576 = vmatpush3.bf16.msra.mxu1 %v4009_v11  ;;  %3318 = vmatprep.mubr.msk.f32.mxu1 %vm3887_vm0, %v3888_v1 }
 0xe54   :  { %3577 = vmatprep.subr.bf16.mxu1 %v3886_v0 }
 0xe57   :  { %3579 = vmatpush3.bf16.msra.mxu1 %v4020_v14 }
 0xe58   :  { %3586 = vmatprep.subr.bf16.mxu1 %v3886_v0 }
 0xf25   :  { %v1246_v55 = vpop.f32.mrb[6].mxu1 }
 0xf26   :  { %v3688_v56 = vadd.f32 %v4037_v17, %v1246_v55  ;;  %v3298_v57 = vpop.f32.mrb[7].mxu1 }
 0xf28   :  { %v2986_v59 = vmul.f32 -1.442695, %v3688_v56 }
 0xf2a   :  { %3768 = vpow2.f32 %v2986_v59 }
 0xf34   :  { %v3769_v60 = vpop.eup %3768 }
 0xf35   :  { %v1254_v61 = vadd.f32 1.0, %v3769_v60 }
 0xf37   :  { %3770 = vrcp.f32 %v1254_v61 }
 0xf41   :  { %v3771_v62 = vpop.eup %3770 }
 0xf42   :  { %v1257_v11 = vmul.f32 2.0, %v3771_v62  ;;  %v1259_v14 = vmul.f32 %v3771_v62, %v1168_v50 }
 0xf44   :  { %v2987_v63 = vadd.f32 -1.0, %v1257_v11 }
 0xf46   :  { %1261 = vrot.lane.b32.xlu0 %v2987_v63, %s3889_s30 }
 0xfb8   :  { %v1262_v2 = vpop.permute.xlu0 %1261 }
 0xfb9   :  { %v1264_v3 = vmul.f32 %v3771_v62, %v1262_v2 }
 0xfbb   :  { %1266 = vrot.lane.b32.xlu1 %v1264_v3, %s3890_s3 }
0x102d   :  { %v1267_v4 = vpop.permute.xlu1 %1266 }
0x102e   :  { %v1269_v5 = vadd.f32 %v1267_v4, %v1259_v14 }
0x1030   :  { %3772 = vtanh.f32 %v1269_v5 }
0x103a   :  { %v3773_v6 = vpop.eup %3772 }
0x103b   :  { %1272 = vrot.lane.b32.xlu0 %v3773_v6, %s3889_s30 }
0x10ad   :  { %v1273_v7 = vpop.permute.xlu0 %1272 }
0x10ae   :  { %v1275_v8 = vmul.f32 %v3771_v62, %v1273_v7 }
0x10b0   :  { %1277 = vrot.lane.b32.xlu1 %v1275_v8, %s3890_s3 }
0x1122   :  { %v4164_v18 = vpop.permute.xlu1 %1277 }
0x1123   :  { %3308 = vmatmul.mubr.msk.f32.vlgmr.msra.gmra.mrb[4].mxu0 %vm671_vm2, %v4164_v18 }
0x1124   :  { %3582 = vmatpush3.bf16.msra.mxu0 %v4156_v12  ;;  %3329 = vmatprep.mubr.msk.f32.mxu0 %vm3887_vm0, %v3888_v1 }
0x1125   :  { %3583 = vmatprep.subr.bf16.mxu0 %v3886_v0 }
0x1128   :  { %3585 = vmatpush3.bf16.msra.mxu0 %v4169_v19 }
0x1129   :  { %3592 = vmatprep.subr.bf16.mxu0 %v3886_v0 }
0x112b   :  { %3330 = vmatmul.mubr.msk.f32.vlgmr.msra.gmra.mrb[8].mxu0 %vm671_vm2, %v4078_v40 }
0x112c   :  { %3594 = vmatpush3.bf16.msra.mxu0 %v4156_v12  ;;  %3351 = vmatprep.mubr.msk.f32.mxu0 %vm3887_vm0, %v3888_v1 }
0x112d   :  { %3595 = vmatprep.subr.bf16.mxu0 %v3886_v0 }
0x1130   :  { %3597 = vmatpush3.bf16.msra.mxu0 %v4169_v19 }
0x1131   :  { %3604 = vmatprep.subr.bf16.mxu0 %v3886_v0 }
0x1133   :  { %3352 = vmatmul.mubr.msk.f32.vlgmr.msra.gmra.mrb[10].mxu0 %vm671_vm2, %v4108_v16 }
0x1134   :  { %3606 = vmatpush3.bf16.msra.mxu0 %v4156_v12  ;;  %3373 = vmatprep.mubr.msk.f32.mxu0 %vm3887_vm0, %v3888_v1 }
0x1135   :  { %3607 = vmatprep.subr.bf16.mxu0 %v3886_v0 }
0x1138   :  { %3609 = vmatpush3.bf16.msra.mxu0 %v4169_v19 }
0x1139   :  { %3616 = vmatprep.subr.bf16.mxu0 %v3886_v0 }
0x113b   :  { %3374 = vmatmul.mubr.msk.f32.vlgmr.msra.gmra.mrb[12].mxu0 %vm671_vm2, %v1177_v54 }
0x113c   :  { %3618 = vmatpush3.bf16.msra.mxu0 %v4156_v12  ;;  %3395 = vmatprep.mubr.msk.f32.mxu0 %vm3887_vm0, %v3888_v1 }
0x113d   :  { %3619 = vmatprep.subr.bf16.mxu0 %v3886_v0 }
0x1140   :  { %3621 = vmatpush3.bf16.msra.mxu0 %v4169_v19 }
0x1141   :  { %3628 = vmatprep.subr.bf16.mxu0 %v3886_v0 }
0x11f6   :  { %v1347_v40 = vpop.f32.mrb[4].mxu0 }
0x11f7   :  { %v3689_v16 = vadd.f32 %v4037_v17, %v1347_v40  ;;  %v3309_v20 = vpop.f32.mrb[5].mxu0 }
0x11f9   :  { %v2989_v21 = vmul.f32 -1.442695, %v3689_v16 }
0x11fb   :  { %3774 = vpow2.f32 %v2989_v21 }
0x1205   :  { %v3775_v22 = vpop.eup %3774 }
0x1206   :  { %v1355_v23 = vadd.f32 1.0, %v3775_v22 }
0x1208   :  { %3776 = vrcp.f32 %v1355_v23 }
0x1212   :  { %v3777_v24 = vpop.eup %3776 }
0x1213   :  { %v1358_v25 = vmul.f32 2.0, %v3777_v24  ;;  %v1360_v29 = vmul.f32 %v3777_v24, %v1269_v5 }
0x1215   :  { %v2990_v26 = vadd.f32 -1.0, %v1358_v25 }
0x1217   :  { %1362 = vrot.lane.b32.xlu0 %v2990_v26, %s3889_s30 }
0x1289   :  { %v1363_v27 = vpop.permute.xlu0 %1362 }
0x128a   :  { %v1365_v28 = vmul.f32 %v3777_v24, %v1363_v27 }
0x128c   :  { %1367 = vrot.lane.b32.xlu1 %v1365_v28, %s3890_s3 }
0x12fe   :  { %v1368_v30 = vpop.permute.xlu1 %1367 }
0x12ff   :  { %v4202_v31 = vadd.f32 %v1368_v30, %v1360_v29 }
0x1301   :  { %3778 = vtanh.f32 %v4202_v31 }
0x130b   :  { %v3779_v32 = vpop.eup %3778 }
0x130c   :  { %1373 = vrot.lane.b32.xlu0 %v3779_v32, %s3889_s30 }
0x137e   :  { %v1374_v33 = vpop.permute.xlu0 %1373 }
0x137f   :  { %v1376_v34 = vmul.f32 %v3777_v24, %v1374_v33 }
0x1381   :  { %1378 = vrot.lane.b32.xlu1 %v1376_v34, %s3890_s3 }
0x13f3   :  { %v1379_v42 = vpop.permute.xlu1 %1378 }
0x13f4   :  { %3319 = vmatmul.mubr.msk.f32.vlgmr.msra.gmra.mrb[8].mxu1 %vm671_vm2, %v1379_v42  ;;  %3396 = vmatmul.mubr.msk.f32.vlgmr.msra.gmra.mrb[14].mxu0 %vm671_vm2, %v1379_v42 }
0x13f5   :  { %3588 = vmatpush3.bf16.msra.mxu1 %v4156_v12  ;;  %3630 = vmatpush3.bf16.msra.mxu0 %v4213_v38 }
0x13f6   :  { %3589 = vmatprep.subr.bf16.mxu1 %v3886_v0  ;;  %3631 = vmatprep.subr.bf16.mxu0 %v3886_v0 }
0x13f7   :  { %3340 = vmatprep.mubr.msk.f32.mxu1 %vm3887_vm0, %v3888_v1  ;;  %3417 = vmatprep.mubr.msk.f32.mxu0 %vm3887_vm0, %v3888_v1 }
0x13f9   :  { %3591 = vmatpush3.bf16.msra.mxu1 %v4169_v19  ;;  %3633 = vmatpush3.bf16.msra.mxu0 %v4225_v43 }
0x13fa   :  { %3598 = vmatprep.subr.bf16.mxu1 %v3886_v0  ;;  %3640 = vmatprep.subr.bf16.mxu0 %v3886_v0 }
0x13fc   :  { %3341 = vmatmul.mubr.msk.f32.vlgmr.msra.gmra.mrb[10].mxu1 %vm671_vm2, %v4093_v58  ;;  %3418 = vmatmul.mubr.f32.vlgmr.msra.gmra.mrb[8].mxu0 %v3888_v1 }
0x13fd   :  { %3600 = vmatpush3.bf16.msra.mxu1 %v4156_v12  ;;  %3362 = vmatprep.mubr.msk.f32.mxu1 %vm3887_vm0, %v3888_v1 }
0x13fe   :  { %3601 = vmatprep.subr.bf16.mxu1 %v3886_v0  ;;  %3642 = vmatpush3.bf16.msra.mxu0 %v4213_v38 }
0x13ff   :  { %3643 = vmatprep.subr.bf16.mxu0 %v3886_v0  ;;  %3439 = vmatprep.mubr.msk.f32.mxu0 %vm3887_vm0, %v3888_v1 }
0x1401   :  { %3603 = vmatpush3.bf16.msra.mxu1 %v4169_v19 }
0x1402   :  { %3610 = vmatprep.subr.bf16.mxu1 %v3886_v0  ;;  %3645 = vmatpush3.bf16.msra.mxu0 %v4225_v43 }
0x1403   :  { %3652 = vmatprep.subr.bf16.mxu0 %v3886_v0 }
0x1404   :  { %3363 = vmatmul.mubr.msk.f32.vlgmr.msra.gmra.mrb[12].mxu1 %vm671_vm2, %v4123_v35 }
0x1405   :  { %3612 = vmatpush3.bf16.msra.mxu1 %v4156_v12  ;;  %3384 = vmatprep.mubr.msk.f32.mxu1 %vm3887_vm0, %v3888_v1 }
0x1406   :  { %3613 = vmatprep.subr.bf16.mxu1 %v3886_v0 }
0x1409   :  { %3615 = vmatpush3.bf16.msra.mxu1 %v4169_v19 }
0x140a   :  { %3622 = vmatprep.subr.bf16.mxu1 %v3886_v0 }
0x140c   :  { %3385 = vmatmul.mubr.msk.f32.vlgmr.msra.gmra.mrb[14].mxu1 %vm671_vm2, %v4164_v18 }
0x140d   :  { %3624 = vmatpush3.bf16.msra.mxu1 %v4156_v12  ;;  %3406 = vmatprep.mubr.msk.f32.mxu1 %vm3887_vm0, %v3888_v1 }
0x140e   :  { %3625 = vmatprep.subr.bf16.mxu1 %v3886_v0 }
0x1411   :  { %3627 = vmatpush3.bf16.msra.mxu1 %v4169_v19 }
0x1412   :  { %3634 = vmatprep.subr.bf16.mxu1 %v3886_v0 }
0x14c7   :  { %v1448_v58 = vpop.f32.mrb[8].mxu1 }
0x14c8   :  { %v3690_v35 = vadd.f32 %v4037_v17, %v1448_v58  ;;  %v3320_v44 = vpop.f32.mrb[9].mxu1 }
0x14ca   :  { %v2992_v45 = vmul.f32 -1.442695, %v3690_v35 }
0x14cc   :  { %3780 = vpow2.f32 %v2992_v45 }
0x14cf   :  { %v2124_v47 = vpop.f32.mrb[8].mxu0 }
0x14d0   :  { %v3691_v48 = vadd.f32 %v4272_v46, %v2124_v47  ;;  %v3419_v49 = vpop.f32.mrb[9].mxu0 }
0x14d2   :  { %v3003_v50 = vmul.f32 -1.442695, %v3691_v48 }
0x14d4   :  { %3782 = vpow2.f32 %v3003_v50 }
0x14d6   :  { %v3781_v51 = vpop.eup %3780 }
0x14d7   :  { %v1456_v52 = vadd.f32 1.0, %v3781_v51 }
0x14d9   :  { %3784 = vrcp.f32 %v1456_v52 }
0x14de   :  { %v3783_v53 = vpop.eup %3782 }
0x14df   :  { %v2132_v54 = vadd.f32 1.0, %v3783_v53 }
0x14e1   :  { %3786 = vrcp.f32 %v2132_v54 }
0x14e3   :  { %v3785_v17 = vpop.eup %3784 }
0x14e4   :  { %v1459_v55 = vmul.f32 2.0, %v3785_v17  ;;  %v1461_v2 = vmul.f32 %v3785_v17, %v4202_v31 }
0x14e6   :  { %v2993_v56 = vadd.f32 -1.0, %v1459_v55 }
0x14e8   :  { %1463 = vrot.lane.b32.xlu0 %v2993_v56, %s3889_s30 }
0x14eb   :  { %v3787_v57 = vpop.eup %3786 }
0x14ec   :  { %v2135_v59 = vmul.f32 2.0, %v3787_v57  ;;  %v2137_v4 = vmul.f32 0.0, %v3787_v57 }
0x14ee   :  { %v3004_v60 = vadd.f32 -1.0, %v2135_v59 }
0x14f0   :  { %2139 = vrot.lane.b32.xlu1 %v3004_v60, %s3889_s30 }
0x155a   :  { %v1464_v61 = vpop.permute.xlu0 %1463 }
0x155b   :  { %v1466_v62 = vmul.f32 %v3785_v17, %v1464_v61 }
0x155d   :  { %1468 = vrot.lane.b32.xlu0 %v1466_v62, %s3890_s3 }
0x1562   :  { %v2140_v11 = vpop.permute.xlu1 %2139 }
0x1563   :  { %v2142_v63 = vmul.f32 %v3787_v57, %v2140_v11 }
0x1565   :  { %2144 = vrot.lane.b32.xlu1 %v2142_v63, %s3890_s3 }
0x15cf   :  { %v1469_v3 = vpop.permute.xlu0 %1468 }
0x15d0   :  { %v1471_v14 = vadd.f32 %v1469_v3, %v1461_v2 }
0x15d2   :  { %3788 = vtanh.f32 %v1471_v14 }
0x15d7   :  { %v2145_v5 = vpop.permute.xlu1 %2144 }
0x15d8   :  { %v2147_v6 = vadd.f32 %v2145_v5, %v2137_v4 }
0x15da   :  { %3790 = vtanh.f32 %v2147_v6 }
0x15dc   :  { %v3789_v7 = vpop.eup %3788 }
0x15dd   :  { %1474 = vrot.lane.b32.xlu0 %v3789_v7, %s3889_s30 }
0x15e4   :  { %v3791_v8 = vpop.eup %3790 }
0x15e5   :  { %2150 = vrot.lane.b32.xlu1 %v3791_v8, %s3889_s30 }
0x164f   :  { %v1475_v9 = vpop.permute.xlu0 %1474 }
0x1650   :  { %v1477_v10 = vmul.f32 %v3785_v17, %v1475_v9 }
0x1652   :  { %1984 = vrot.lane.b32.xlu0 %v1477_v10, %s3890_s3 }
0x1657   :  { %v2151_v12 = vpop.permute.xlu1 %2150 }
0x1658   :  { %v2153_v13 = vmul.f32 %v3787_v57, %v2151_v12 }
0x165a   :  { %2155 = vrot.lane.b32.xlu1 %v2153_v13, %s3890_s3 }
0x16c4   :  { %v1985_v15 = vpop.permute.xlu0 %1984 }
0x16c5   :  { %3407 = vmatmul.mubr.msk.f32.vlgmr.msra.gmra.mrb[16].mxu1 %vm671_vm2, %v1985_v15 }
0x16c6   :  { %3636 = vmatpush3.bf16.msra.mxu1 %v4213_v38  ;;  %3428 = vmatprep.mubr.msk.f32.mxu1 %vm3887_vm0, %v3888_v1 }
0x16c7   :  { %3637 = vmatprep.subr.bf16.mxu1 %v3886_v0 }
0x16ca   :  { %3639 = vmatpush3.bf16.msra.mxu1 %v4225_v43 }
0x16cb   :  { %3646 = vmatprep.subr.bf16.mxu1 %v3886_v0 }
0x16cc   :  { %v2156_v18 = vpop.permute.xlu1 %2155 }
0x16cd   :  { %3429 = vmatmul.mubr.msk.f32.vlgmr.msra.gmra.mrb[10].mxu1 %vm671_vm2, %v2156_v18 }
0x16ce   :  { %3648 = vmatpush3.bf16.msra.mxu1 %v4213_v38  ;;  %3450 = vmatprep.mubr.msk.f32.mxu1 %vm3887_vm0, %v3888_v1 }
0x16cf   :  { %3649 = vmatprep.subr.bf16.mxu1 %v3886_v0 }
0x16d2   :  { %3651 = vmatpush3.bf16.msra.mxu1 %v4225_v43 }
0x16d3   :  { %3658 = vmatprep.subr.bf16.mxu1 %v3886_v0 }
0x17a0   :  { %v2225_v19 = vpop.f32.mrb[10].mxu1 }
0x17a1   :  { %v3692_v40 = vadd.f32 %v4272_v46, %v2225_v19  ;;  %v3430_v16 = vpop.f32.mrb[11].mxu1 }
0x17a3   :  { %v3006_v20 = vmul.f32 -1.442695, %v3692_v40 }
0x17a5   :  { %3792 = vpow2.f32 %v3006_v20 }
0x17af   :  { %v3793_v21 = vpop.eup %3792 }
0x17b0   :  { %v2233_v22 = vadd.f32 1.0, %v3793_v21 }
0x17b2   :  { %3794 = vrcp.f32 %v2233_v22 }
0x17bc   :  { %v3795_v23 = vpop.eup %3794 }
0x17bd   :  { %v2236_v24 = vmul.f32 2.0, %v3795_v23  ;;  %v2238_v28 = vmul.f32 %v3795_v23, %v2147_v6 }
0x17bf   :  { %v3007_v25 = vadd.f32 -1.0, %v2236_v24 }
0x17c1   :  { %2240 = vrot.lane.b32.xlu0 %v3007_v25, %s3889_s30 }
0x1833   :  { %v2241_v26 = vpop.permute.xlu0 %2240 }
0x1834   :  { %v2243_v27 = vmul.f32 %v3795_v23, %v2241_v26 }
0x1836   :  { %2245 = vrot.lane.b32.xlu1 %v2243_v27, %s3890_s3 }
0x18a8   :  { %v2246_v29 = vpop.permute.xlu1 %2245 }
0x18a9   :  { %v2248_v30 = vadd.f32 %v2246_v29, %v2238_v28 }
0x18ab   :  { %3796 = vtanh.f32 %v2248_v30 }
0x18b5   :  { %v3797_v31 = vpop.eup %3796 }
0x18b6   :  { %2251 = vrot.lane.b32.xlu0 %v3797_v31, %s3889_s30 }
0x1928   :  { %v2252_v32 = vpop.permute.xlu0 %2251 }
0x1929   :  { %v2254_v33 = vmul.f32 %v3795_v23, %v2252_v32 }
0x192b   :  { %2256 = vrot.lane.b32.xlu1 %v2254_v33, %s3890_s3 }
0x199d   :  { %v2257_v34 = vpop.permute.xlu1 %2256 }
0x199e   :  { %3440 = vmatmul.mubr.msk.f32.vlgmr.msra.gmra.mrb[10].mxu0 %vm671_vm2, %v2257_v34 }
0x199f   :  { %3654 = vmatpush3.bf16.msra.mxu0 %v4213_v38  ;;  %3461 = vmatprep.mubr.msk.f32.mxu0 %vm3887_vm0, %v3888_v1 }
0x19a0   :  { %3655 = vmatprep.subr.bf16.mxu0 %v3886_v0 }
0x19a3   :  { %3657 = vmatpush3.bf16.msra.mxu0 %v4225_v43 }
0x19a4   :  { %3664 = vmatprep.subr.bf16.mxu0 %v3886_v0 }
0x1a71   :  { %v2326_v36 = vpop.f32.mrb[10].mxu0 }
0x1a72   :  { %v3693_v37 = vadd.f32 %v4272_v46, %v2326_v36  ;;  %v3441_v39 = vpop.f32.mrb[11].mxu0 }
0x1a74   :  { %v3009_v41 = vmul.f32 -1.442695, %v3693_v37 }
0x1a76   :  { %3798 = vpow2.f32 %v3009_v41 }
0x1a80   :  { %v3799_v42 = vpop.eup %3798 }
0x1a81   :  { %v2334_v58 = vadd.f32 1.0, %v3799_v42 }
0x1a83   :  { %3800 = vrcp.f32 %v2334_v58 }
0x1a8d   :  { %v3801_v35 = vpop.eup %3800 }
0x1a8e   :  { %v2337_v44 = vmul.f32 2.0, %v3801_v35  ;;  %v2339_v49 = vmul.f32 %v3801_v35, %v2248_v30 }
0x1a90   :  { %v3010_v45 = vadd.f32 -1.0, %v2337_v44 }
0x1a92   :  { %2341 = vrot.lane.b32.xlu0 %v3010_v45, %s3889_s30 }
0x1b04   :  { %v2342_v47 = vpop.permute.xlu0 %2341 }
0x1b05   :  { %v2344_v48 = vmul.f32 %v3801_v35, %v2342_v47 }
0x1b07   :  { %2346 = vrot.lane.b32.xlu1 %v2344_v48, %s3890_s3 }
0x1b79   :  { %v2347_v50 = vpop.permute.xlu1 %2346 }
0x1b7a   :  { %v2349_v51 = vadd.f32 %v2347_v50, %v2339_v49 }
0x1b7c   :  { %3802 = vtanh.f32 %v2349_v51 }
0x1b86   :  { %v3803_v52 = vpop.eup %3802 }
0x1b87   :  { %2352 = vrot.lane.b32.xlu0 %v3803_v52, %s3889_s30 }
0x1bf9   :  { %v2353_v53 = vpop.permute.xlu0 %2352 }
0x1bfa   :  { %v2355_v54 = vmul.f32 %v3801_v35, %v2353_v53 }
0x1bfc   :  { %2357 = vrot.lane.b32.xlu1 %v2355_v54, %s3890_s3 }
0x1c6e   :  { %v2358_v17 = vpop.permute.xlu1 %2357 }
0x1c6f   :  { %3451 = vmatmul.mubr.msk.f32.vlgmr.msra.gmra.mrb[12].mxu1 %vm671_vm2, %v2358_v17 }
0x1c70   :  { %3660 = vmatpush3.bf16.msra.mxu1 %v4213_v38  ;;  %3472 = vmatprep.mubr.msk.f32.mxu1 %vm3887_vm0, %v3888_v1 }
0x1c71   :  { %3661 = vmatprep.subr.bf16.mxu1 %v3886_v0 }
0x1c74   :  { %3663 = vmatpush3.bf16.msra.mxu1 %v4225_v43 }
0x1c75   :  { %3670 = vmatprep.subr.bf16.mxu1 %v3886_v0 }
0x1d42   :  { %v2427_v55 = vpop.f32.mrb[12].mxu1 }
0x1d43   :  { %v3694_v56 = vadd.f32 %v4272_v46, %v2427_v55  ;;  %v3452_v57 = vpop.f32.mrb[13].mxu1 }
0x1d45   :  { %v3012_v59 = vmul.f32 -1.442695, %v3694_v56 }
0x1d47   :  { %3804 = vpow2.f32 %v3012_v59 }
0x1d51   :  { %v3805_v60 = vpop.eup %3804 }
0x1d52   :  { %v2435_v61 = vadd.f32 1.0, %v3805_v60 }
0x1d54   :  { %3806 = vrcp.f32 %v2435_v61 }
0x1d5e   :  { %v3807_v62 = vpop.eup %3806 }
0x1d5f   :  { %v2438_v11 = vmul.f32 2.0, %v3807_v62  ;;  %v2440_v14 = vmul.f32 %v3807_v62, %v2349_v51 }
0x1d61   :  { %v3013_v63 = vadd.f32 -1.0, %v2438_v11 }
0x1d63   :  { %2442 = vrot.lane.b32.xlu0 %v3013_v63, %s3889_s30 }
0x1dd5   :  { %v2443_v2 = vpop.permute.xlu0 %2442 }
0x1dd6   :  { %v2445_v3 = vmul.f32 %v3807_v62, %v2443_v2 }
0x1dd8   :  { %2447 = vrot.lane.b32.xlu1 %v2445_v3, %s3890_s3 }
0x1e4a   :  { %v2448_v4 = vpop.permute.xlu1 %2447 }
0x1e4b   :  { %v2450_v5 = vadd.f32 %v2448_v4, %v2440_v14 }
0x1e4d   :  { %3808 = vtanh.f32 %v2450_v5 }
0x1e57   :  { %v3809_v6 = vpop.eup %3808 }
0x1e58   :  { %2453 = vrot.lane.b32.xlu0 %v3809_v6, %s3889_s30 }
0x1eca   :  { %v2454_v7 = vpop.permute.xlu0 %2453 }
0x1ecb   :  { %v2456_v8 = vmul.f32 %v3807_v62, %v2454_v7 }
0x1ecd   :  { %2458 = vrot.lane.b32.xlu1 %v2456_v8, %s3890_s3 }
0x1f3f   :  { %v2459_v9 = vpop.permute.xlu1 %2458 }
0x1f40   :  { %3462 = vmatmul.mubr.msk.f32.vlgmr.msra.gmra.mrb[12].mxu0 %vm671_vm2, %v2459_v9 }
0x1f41   :  { %3666 = vmatpush3.bf16.msra.mxu0 %v4213_v38  ;;  %3483 = vmatprep.mubr.msk.f32.mxu0 %vm3887_vm0, %v3888_v1 }
0x1f42   :  { %3667 = vmatprep.subr.bf16.mxu0 %v3886_v0 }
0x1f45   :  { %3669 = vmatpush3.bf16.msra.mxu0 %v4225_v43 }
0x1f46   :  { %3676 = vmatprep.subr.bf16.mxu0 %v3886_v0 }
0x2013   :  { %v2528_v10 = vpop.f32.mrb[12].mxu0 }
0x2014   :  { %v3695_v12 = vadd.f32 %v4272_v46, %v2528_v10  ;;  %v3463_v13 = vpop.f32.mrb[13].mxu0 }
0x2016   :  { %v3015_v15 = vmul.f32 -1.442695, %v3695_v12 }
0x2018   :  { %3810 = vpow2.f32 %v3015_v15 }
0x2022   :  { %v3811_v18 = vpop.eup %3810 }
0x2023   :  { %v2536_v19 = vadd.f32 1.0, %v3811_v18 }
0x2025   :  { %3812 = vrcp.f32 %v2536_v19 }
0x202f   :  { %v3813_v40 = vpop.eup %3812 }
0x2030   :  { %v2539_v16 = vmul.f32 2.0, %v3813_v40  ;;  %v2541_v23 = vmul.f32 %v3813_v40, %v2450_v5 }
0x2032   :  { %v3016_v20 = vadd.f32 -1.0, %v2539_v16  ;;  %v2863_v16 = vld [vmem:[%s4388_s7 + $0x10] sm:$0xff] }
0x2034   :  { %2543 = vrot.lane.b32.xlu0 %v3016_v20, %s3889_s30 }
0x20a6   :  { %v2544_v21 = vpop.permute.xlu0 %2543 }
0x20a7   :  { %v2546_v22 = vmul.f32 %v3813_v40, %v2544_v21  ;;  %v2864_v21 = vld [vmem:[%s4388_s7 + $0x18] sm:$0xff] }
0x20a9   :  { %2548 = vrot.lane.b32.xlu1 %v2546_v22, %s3890_s3  ;;  %v3680_v22 = vpack.c.bf16 %v2864_v21, %v2863_v16 }
0x211b   :  { %v2549_v24 = vpop.permute.xlu1 %2548 }
0x211c   :  { %v2551_v25 = vadd.f32 %v2549_v24, %v2541_v23 }
0x211e   :  { %3814 = vtanh.f32 %v2551_v25 }
0x2128   :  { %v3815_v26 = vpop.eup %3814 }
0x2129   :  { %2554 = vrot.lane.b32.xlu0 %v3815_v26, %s3889_s30 }
0x219b   :  { %v2555_v27 = vpop.permute.xlu0 %2554 }
0x219c   :  { %v2557_v28 = vmul.f32 %v3813_v40, %v2555_v27  ;;  %v2862_v40 = vld [vmem:[%s4388_s7 + $0x8] sm:$0xff]  ;;  %v3026_v27 = vld [vmem:[#allocation4] ss:$0 sm:$0xff] }
0x219e   :  { %2559 = vrot.lane.b32.xlu1 %v2557_v28, %s3890_s3 }
0x2210   :  { %v2560_v29 = vpop.permute.xlu1 %2559 }
0x2211   :  { %3473 = vmatmul.mubr.msk.f32.vlgmr.msra.gmra.mrb[14].mxu1 %vm671_vm2, %v2560_v29 }
0x2212   :  { %3672 = vmatpush3.bf16.msra.mxu1 %v4213_v38  ;;  %3494 = vmatprep.mubr.msk.f32.mxu1 %vm3887_vm0, %v3888_v1 }
0x2213   :  { %3673 = vmatprep.subr.bf16.mxu1 %v3886_v0 }
0x2216   :  { %3675 = vmatpush3.bf16.msra.mxu1 %v4225_v43 }
0x22e4   :  { %v2629_v30 = vpop.f32.mrb[14].mxu1 }
0x22e5   :  { %v3696_v31 = vadd.f32 %v4272_v46, %v2629_v30  ;;  %v3474_v32 = vpop.f32.mrb[15].mxu1 }
0x22e7   :  { %v3018_v33 = vmul.f32 -1.442695, %v3696_v31 }
0x22e9   :  { %3816 = vpow2.f32 %v3018_v33 }
0x22f3   :  { %v3817_v34 = vpop.eup %3816 }
0x22f4   :  { %v2637_v36 = vadd.f32 1.0, %v3817_v34 }
0x22f6   :  { %3818 = vrcp.f32 %v2637_v36 }
0x2300   :  { %v3819_v37 = vpop.eup %3818 }
0x2301   :  { %v2640_v39 = vmul.f32 2.0, %v3819_v37  ;;  %v2642_v58 = vmul.f32 %v3819_v37, %v2551_v25 }
0x2303   :  { %v3019_v41 = vadd.f32 -1.0, %v2640_v39 }
0x2305   :  { %2644 = vrot.lane.b32.xlu0 %v3019_v41, %s3889_s30 }
0x2377   :  { %v2645_v38 = vpop.permute.xlu0 %2644 }
0x2378   :  { %v2647_v42 = vmul.f32 %v3819_v37, %v2645_v38 }
0x237a   :  { %2649 = vrot.lane.b32.xlu1 %v2647_v42, %s3890_s3 }
0x23ec   :  { %v2650_v43 = vpop.permute.xlu1 %2649 }
0x23ed   :  { %v2652_v35 = vadd.f32 %v2650_v43, %v2642_v58 }
0x23ef   :  { %3820 = vtanh.f32 %v2652_v35 }
0x23f9   :  { %v3821_v44 = vpop.eup %3820 }
0x23fa   :  { %2655 = vrot.lane.b32.xlu0 %v3821_v44, %s3889_s30 }
0x246c   :  { %v2656_v45 = vpop.permute.xlu0 %2655 }
0x246d   :  { %v2658_v47 = vmul.f32 %v3819_v37, %v2656_v45 }
0x246f   :  { %2660 = vrot.lane.b32.xlu1 %v2658_v47, %s3890_s3 }
0x24e1   :  { %v2661_v48 = vpop.permute.xlu1 %2660 }
0x24e2   :  { %3484 = vmatmul.mubr.msk.f32.vlgmr.msra.gmra.mrb[14].mxu0 %vm671_vm2, %v2661_v48 }
0x24e3   :  { %3505 = vmatprep.mubr.msk.f32.mxu0 %vm3887_vm0, %v3888_v1 }
0x25b5   :  { %v2730_v49 = vpop.f32.mrb[14].mxu0 }
0x25b6   :  { %v3697_v50 = vadd.f32 %v4272_v46, %v2730_v49  ;;  %v3485_v51 = vpop.f32.mrb[15].mxu0 }
0x25b8   :  { %v3021_v52 = vmul.f32 -1.442695, %v3697_v50 }
0x25ba   :  { %3822 = vpow2.f32 %v3021_v52 }
0x25c4   :  { %v3823_v53 = vpop.eup %3822 }
0x25c5   :  { %v2738_v54 = vadd.f32 1.0, %v3823_v53 }
0x25c7   :  { %3824 = vrcp.f32 %v2738_v54 }
0x25d1   :  { %v3825_v17 = vpop.eup %3824 }
0x25d2   :  { %v2741_v55 = vmul.f32 2.0, %v3825_v17  ;;  %v2743_v60 = vmul.f32 %v3825_v17, %v2652_v35 }
0x25d4   :  { %v3022_v56 = vadd.f32 -1.0, %v2741_v55 }
0x25d6   :  { %2745 = vrot.lane.b32.xlu0 %v3022_v56, %s3889_s30 }
0x2648   :  { %v2746_v57 = vpop.permute.xlu0 %2745 }
0x2649   :  { %v2748_v59 = vmul.f32 %v3825_v17, %v2746_v57 }
0x264b   :  { %2750 = vrot.lane.b32.xlu1 %v2748_v59, %s3890_s3 }
0x26bd   :  { %v2751_v1 = vpop.permute.xlu1 %2750 }
0x26be   :  { %v2753_v61 = vadd.f32 %v2751_v1, %v2743_v60 }
0x26c0   :  { %3826 = vtanh.f32 %v2753_v61 }
0x26ca   :  { %v3827_v62 = vpop.eup %3826 }
0x26cb   :  { %2756 = vrot.lane.b32.xlu0 %v3827_v62, %s3889_s30 }
0x273d   :  { %v2757_v11 = vpop.permute.xlu0 %2756 }
0x273e   :  { %v2759_v63 = vmul.f32 %v3825_v17, %v2757_v11 }
0x2740   :  { %2761 = vrot.lane.b32.xlu1 %v2759_v63, %s3890_s3 }
0x27b2   :  { %v2762_v2 = vpop.permute.xlu1 %2761 }
0x27b3   :  { %3495 = vmatmul.mubr.msk.f32.vlgmr.msra.gmra.mrb[16].mxu1 %vm671_vm2, %v2762_v2 }
0x2886   :  { %v2831_v3 = vpop.f32.mrb[16].mxu1 }
0x2887   :  { %v3698_v14 = vadd.f32 %v4272_v46, %v2831_v3  ;;  %v3496_v4 = vpop.f32.mrb[17].mxu1  ;;  %v2861_v46 = vld [vmem:[%s4388_s7] sm:$0xff] }
0x2888   :  { %v3677_v20 = vpack.c.bf16 %v2862_v40, %v2861_v46 }
0x2889   :  { %v3024_v5 = vmul.f32 -1.442695, %v3698_v14 }
0x288a   :  { %3678 = vmatpush3.bf16.msra.mxu0 %v3677_v20 }
0x288b   :  { %3828 = vpow2.f32 %v3024_v5  ;;  %3679 = vmatprep.subr.bf16.mxu0 %v3886_v0 }
0x288e   :  { %3681 = vmatpush3.bf16.msra.mxu0 %v3680_v22 }
0x2895   :  { %v3829_v6 = vpop.eup %3828 }
0x2896   :  { %v2839_v7 = vadd.f32 1.0, %v3829_v6 }
0x2898   :  { %3830 = vrcp.f32 %v2839_v7 }
0x28a2   :  { %v3831_v8 = vpop.eup %3830 }
0x28a3   :  { %v2842_v9 = vmul.f32 2.0, %v3831_v8  ;;  %v2844_v15 = vmul.f32 %v3831_v8, %v2753_v61 }
0x28a5   :  { %v3025_v10 = vadd.f32 -1.0, %v2842_v9 }
0x28a7   :  { %2846 = vrot.lane.b32.xlu0 %v3025_v10, %s3889_s30 }
0x2919   :  { %v2847_v12 = vpop.permute.xlu0 %2846 }
0x291a   :  { %v2849_v13 = vmul.f32 %v3831_v8, %v2847_v12 }
0x291c   :  { %2851 = vrot.lane.b32.xlu1 %v2849_v13, %s3890_s3 }
0x298e   :  { %v2852_v18 = vpop.permute.xlu1 %2851 }
0x298f   :  { %v2854_v19 = vadd.f32 %v2852_v18, %v2844_v15 }
0x2991   :  { %3832 = vtanh.f32 %v2854_v19 }
0x299b   :  { %v3833_v23 = vpop.eup %3832 }
0x299c   :  { %2857 = vrot.lane.b32.xlu0 %v3833_v23, %s3889_s30 }
0x2a0e   :  { %v2858_v24 = vpop.permute.xlu0 %2857 }
0x2a0f   :  { %v2860_v25 = vmul.f32 %v3831_v8, %v2858_v24 }
0x2a11   :  { %2873 = vrot.lane.b32.xlu1 %v2860_v25, %s3890_s3 }
0x2a83   :  { %v2874_v26 = vpop.permute.xlu1 %2873 }
0x2a84   :  { %3506 = vmatmul.mubr.msk.f32.vlgmr.msra.gmra.mrb[16].mxu0 %vm671_vm2, %v2874_v26 }
0x2b57   :  { %v2943_v28 = vpop.f32.mrb[16].mxu0 }
0x2b58   :  { %v2944_v29 = vadd.f32 %v3026_v27, %v2943_v28  ;;  %v3507_v30 = vpop.f32.mrb[17].mxu0 }
0x2b5a   :  { %2948 = vst.msk [vmem:[%s4390_s9] sm:$0x3] %vm2947_vm3, %v2944_v29 }
0x2b5b   :  { %2953 = vsyncpa [#allocation3], 1 }
0x2b5c   :  { %2954 = vsyncpa [#allocation5], 1 }

</bundles_post_ra>
